<compile_context>
chip_gen: v7x
topology: tpu7x:2x2x1
jax: 0.10.0
libtpu: 0.0.40
codegen_flags: <defaults>
</compile_context>

<pallas_src>
import functools

import jax
import jax.numpy as jnp
from jax.experimental import pallas as pl
from jax.experimental.pallas import tpu as pltpu

EPS = 1e-5

_FUSED_X_BUDGET = 4 * 1024 * 1024      # padded x footprint budget for fused path
_FUSED_MAT_BUDGET = 8 * 1024 * 1024    # reduce/expand ones-matrices budget
_STREAM_TILE_BUDGET = 6 * 1024 * 1024  # per-block budget for the streamed path
_VMEM_LIMIT = 40 * 1024 * 1024         # scoped-VMEM limit (v7x: 64 MiB physical)


def _padded_bytes_2d(rows, cols, itemsize=4):
    """VMEM footprint of a (rows, cols) tile after (8, 128) layout padding."""
    return ((rows + 7) // 8 * 8) * ((cols + 127) // 128 * 128) * itemsize


# ---------------------------------------------------------------------------
# Fused single-launch kernel (x resident in VMEM, lane-dense layout)
# ---------------------------------------------------------------------------
def _bn_fused_kernel(x_ref, gamma_ref, beta_ref, red_ref, exp_ref, o_ref, *,
                     inv_n, eps):
    """BN stats + apply in one kernel.

    x_ref:     (bs, C*step)  lane-dense input
    gamma_ref: (1, C)        BatchNorm1d weight
    beta_ref:  (1, C)        BatchNorm1d bias
    red_ref:   (C*step, C)   block-diagonal ones matrix (per-channel reduce)
    exp_ref:   (C, C*step)   its transpose (per-channel broadcast/expand)
    o_ref:     (bs, C*step)  output
    """
    x = x_ref[...]
    if x.dtype != jnp.float32:          # trace-time no-op for f32 inputs
        x = x.astype(jnp.float32)
    red = red_ref[...]
    exp = exp_ref[...]

    # Batch-axis reduce first (VPU), then per-channel lane grouping on the MXU.
    s1_row = jnp.sum(x, axis=0, keepdims=True)                                # (1, L)
    mean_c = jnp.dot(s1_row, red, preferred_element_type=jnp.float32) * inv_n  # (1, C)
    mean_row = jnp.dot(mean_c, exp, preferred_element_type=jnp.float32)        # (1, L)

    xm = x - mean_row                                                          # (bs, L)
    s2_row = jnp.sum(xm * xm, axis=0, keepdims=True)                           # (1, L)
    var_c = jnp.dot(s2_row, red, preferred_element_type=jnp.float32) * inv_n   # (1, C)

    a_c = gamma_ref[...] * jax.lax.rsqrt(var_c + eps)                          # (1, C)
    a_row = jnp.dot(a_c, exp, preferred_element_type=jnp.float32)              # (1, L)
    b_row = jnp.dot(beta_ref[...], exp, preferred_element_type=jnp.float32)    # (1, L)

    o_ref[...] = (xm * a_row + b_row).astype(o_ref.dtype)


# ---------------------------------------------------------------------------
# Streamed two-pass kernels (large x)
# ---------------------------------------------------------------------------
def _bn_stats_kernel(x_ref, s_ref):
    """Accumulate lane-dense row sums: s_ref[0]=Sum_b(x), s_ref[1]=Sum_b(x^2)."""
    i = pl.program_id(0)

    @pl.when(i == 0)
    def _init():
        s_ref[...] = jnp.zeros_like(s_ref)

    x = x_ref[...]
    if x.dtype != jnp.float32:
        x = x.astype(jnp.float32)
    s1 = jnp.sum(x, axis=0, keepdims=True)        # (1, L)  batch reduce (VPU)
    s2 = jnp.sum(x * x, axis=0, keepdims=True)    # (1, L)
    s_ref[...] = s_ref[...] + jnp.concatenate([s1, s2], axis=0)


def _bn_apply_kernel(x_ref, ab_ref, o_ref):
    """y = x * a_row + b_row with lane-dense folded coefficients."""
    a = ab_ref[0:1, :]
    b = ab_ref[1:2, :]
    x = x_ref[...]
    if x.dtype != jnp.float32:
        x = x.astype(jnp.float32)
    o_ref[...] = (x * a + b).astype(o_ref.dtype)


# ---------------------------------------------------------------------------
# Wrapper
# ---------------------------------------------------------------------------
def norm_data_forward(x, gamma, beta, *, eps=EPS, force_streamed=False):
    """Pallas implementation of norm_data.forward (training-mode BN stats).

    x:     (bs, c, num_joints, step)
    gamma: (c * num_joints,)  BatchNorm1d weight
    beta:  (c * num_joints,)  BatchNorm1d bias
    returns (bs, c, num_joints, step) with x's dtype
    """
    bs, c, num_joints, step = x.shape
    C = c * num_joints
    L = C * step
    n = bs * step
    inv_n = 1.0 / float(n)

    x2 = x.reshape(bs, L)                         # free row-major, lane-dense view
    gamma_f = gamma.reshape(C).astype(jnp.float32)
    beta_f = beta.reshape(C).astype(jnp.float32)

    x_bytes = _padded_bytes_2d(bs, L)
    mat_bytes = _padded_bytes_2d(L, C) + _padded_bytes_2d(C, L)
    use_fused = (not force_streamed
                 and x_bytes <= _FUSED_X_BUDGET
                 and mat_bytes <= _FUSED_MAT_BUDGET)

    if use_fused:
        # Block-diagonal ones matrices for per-channel lane grouping on the MXU.
        eye = jnp.eye(C, dtype=jnp.float32)
        expand = jnp.repeat(eye, step, axis=1)     # (C, L): E[ch, l] = 1 iff l//step == ch
        reduce_m = expand.T                        # (L, C)
        y2 = pl.pallas_call(
            functools.partial(_bn_fused_kernel, inv_n=inv_n, eps=eps),
            out_shape=jax.ShapeDtypeStruct((bs, L), x.dtype),
            compiler_params=pltpu.CompilerParams(
                vmem_limit_bytes=32 * 1024 * 1024),
        )(x2, gamma_f.reshape(1, C), beta_f.reshape(1, C), reduce_m, expand)
        return y2.reshape(bs, c, num_joints, step)

    # ---------------- Streamed two-pass path (large x) ----------------
    # TODO(synk): for extremely large C*step the streamed path should also tile
    # the lane axis; currently it only tiles the batch axis.
    row_bytes = ((L + 127) // 128 * 128) * 4
    cap = max(1, _STREAM_TILE_BUDGET // row_bytes)
    if cap >= bs:
        tile_b = bs
    else:
        tile_b = min(bs, max(8, (cap // 8) * 8))   # sublane-aligned batch tile
    bs_pad = -(-bs // tile_b) * tile_b
    x2p = x2 if bs_pad == bs else jnp.pad(x2, ((0, bs_pad - bs), (0, 0)))
    nb = bs_pad // tile_b

    # Pass 1: lane-dense per-lane Sum(x), Sum(x^2), resident accumulator block.
    sums = pl.pallas_call(
        _bn_stats_kernel,
        out_shape=jax.ShapeDtypeStruct((2, L), jnp.float32),
        grid=(nb,),
        in_specs=[pl.BlockSpec((tile_b, L), lambda i: (i, 0))],
        out_specs=pl.BlockSpec((2, L), lambda i: (0, 0)),
        compiler_params=pltpu.CompilerParams(
            dimension_semantics=("arbitrary",),
            vmem_limit_bytes=_VMEM_LIMIT),
        cost_estimate=pl.CostEstimate(
            flops=int(3 * bs_pad * L),
            transcendentals=0,
            bytes_accessed=int(x2p.dtype.itemsize * bs_pad * L + 8 * L)),
    )(x2p)

    # Tiny wrapper-side finalize: per-channel stats + folded affine, expanded
    # back to lane-dense rows.  KBs of XLA work, negligible vs streaming x.
    s_c = sums.reshape(2, C, step).sum(axis=2)                  # (2, C)
    mean = s_c[0] * inv_n
    # TODO(synk): streamed path uses E[x^2]-E[x]^2; switch to shifted sums if
    # inputs can have |mean| >> std (catastrophic-cancellation risk).
    var = jnp.maximum(s_c[1] * inv_n - mean * mean, 0.0)
    a = gamma_f * jax.lax.rsqrt(var + eps)
    b = beta_f - mean * a
    ab_rows = jnp.broadcast_to(
        jnp.stack([a, b], axis=0)[:, :, None], (2, C, step)).reshape(2, L)

    # Pass 2: y = x * a + b, lane-dense, megacore-parallel over batch tiles.
    y2p = pl.pallas_call(
        _bn_apply_kernel,
        out_shape=jax.ShapeDtypeStruct((bs_pad, L), x.dtype),
        grid=(nb,),
        in_specs=[pl.BlockSpec((tile_b, L), lambda i: (i, 0)),
                  pl.BlockSpec((2, L), lambda i: (0, 0))],
        out_specs=pl.BlockSpec((tile_b, L), lambda i: (i, 0)),
        compiler_params=pltpu.CompilerParams(
            dimension_semantics=("parallel",),
            vmem_limit_bytes=_VMEM_LIMIT),
        cost_estimate=pl.CostEstimate(
            flops=int(2 * bs_pad * L),
            transcendentals=0,
            bytes_accessed=int(2 * x.dtype.itemsize * bs_pad * L + 8 * L)),
    )(x2p, ab_rows)

    y2 = y2p[:bs] if bs_pad != bs else y2p
    return y2.reshape(bs, c, num_joints, step)


def _reference(x, gamma, beta, eps=EPS):
    bs, c, j, t = x.shape
    C = c * j
    x2 = x.reshape(bs, C, t).astype(jnp.float32)
    mean = jnp.mean(x2, axis=(0, 2), keepdims=True)
    var = jnp.mean((x2 - mean) ** 2, axis=(0, 2), keepdims=True)
    y = (x2 - mean) / jnp.sqrt(var + eps)
    y = y * gamma.reshape(1, C, 1) + beta.reshape(1, C, 1)
    return y.reshape(bs, c, j, t)


if __name__ == "__main__":
    # norm_data(dim=4): BatchNorm1d(dim * 25) = BatchNorm1d(100)
    # input x: (bs, c, num_joints, step) with c * num_joints == dim * 25
    dim = 4
    bs, c, num_joints, step = 2, dim, 25, 8
    C = c * num_joints

    key = jax.random.PRNGKey(0)
    kx, kg, kb = jax.random.split(key, 3)
    # Non-zero mean input to exercise the variance / centering path.
    x = 0.5 + jax.random.normal(kx, (bs, c, num_joints, step), dtype=jnp.float32)
    gamma = 1.0 + 0.1 * jax.random.normal(kg, (C,), dtype=jnp.float32)
    beta = 0.1 * jax.random.normal(kb, (C,), dtype=jnp.float32)

    y_ref = _reference(x, gamma, beta)

    # Fused single-launch path (chosen automatically at this size).
    y = jax.block_until_ready(norm_data_forward(x, gamma, beta))
    assert y.shape == (bs, c, num_joints, step)
    assert jnp.allclose(y, y_ref, atol=1e-4, rtol=1e-4), "fused path mismatch"

    # Also exercise the streamed two-pass path.
    y2 = jax.block_until_ready(
        norm_data_forward(x, gamma, beta, force_streamed=True))
    assert jnp.allclose(y2, y_ref, atol=1e-4, rtol=1e-4), "streamed path mismatch"

    print("KERNEL_OK")
</pallas_src>

<mosaic_0001>
module attributes {stable_mosaic.version = 11 : i64} {
  func.func @_bn_fused_kernel(%arg0: memref<2x800xf32, #tpu.memory_space<vmem>>, %arg1: memref<1x100xf32, #tpu.memory_space<vmem>>, %arg2: memref<1x100xf32, #tpu.memory_space<vmem>>, %arg3: memref<800x100xf32, #tpu.memory_space<vmem>>, %arg4: memref<100x800xf32, #tpu.memory_space<vmem>>, %arg5: memref<2x800xf32, #tpu.memory_space<vmem>>) attributes {dimension_semantics = [], scalar_prefetch = 0 : i64, scratch_operands = 0 : i64, tpu.core_type = #tpu.core_type<tc>} {
    %c0 = arith.constant 0 : index
    %c0_0 = arith.constant 0 : index
    %0 = vector.load %arg0[%c0, %c0_0] : memref<2x800xf32, #tpu.memory_space<vmem>>, vector<2x800xf32>
    %c0_1 = arith.constant 0 : index
    %c0_2 = arith.constant 0 : index
    %1 = vector.load %arg3[%c0_1, %c0_2] : memref<800x100xf32, #tpu.memory_space<vmem>>, vector<800x100xf32>
    %c0_3 = arith.constant 0 : index
    %c0_4 = arith.constant 0 : index
    %2 = vector.load %arg4[%c0_3, %c0_4] : memref<100x800xf32, #tpu.memory_space<vmem>>, vector<100x800xf32>
    %cst = arith.constant dense<0.000000e+00> : vector<800xf32>
    %3 = vector.multi_reduction <add>, %0, %cst [0] : vector<2x800xf32> to vector<800xf32>
    %4 = vector.shape_cast %3 : vector<800xf32> to vector<1x800xf32>
    %cst_5 = arith.constant dense<0.000000e+00> : vector<1x100xf32>
    %5 = tpu.matmul %4, %1, %cst_5 {dimension_numbers = #tpu.dot_dimension_numbers<[1], [0], [0], [1], [0, 0, 1, 1], [], []>} : vector<1x800xf32>, vector<800x100xf32>, vector<1x100xf32> -> vector<1x100xf32>
    %cst_6 = arith.constant 6.250000e-02 : f32
    %6 = vector.broadcast %cst_6 : f32 to vector<1x100xf32>
    %7 = arith.mulf %5, %6 : vector<1x100xf32>
    %cst_7 = arith.constant dense<0.000000e+00> : vector<1x800xf32>
    %8 = tpu.matmul %7, %2, %cst_7 {dimension_numbers = #tpu.dot_dimension_numbers<[1], [0], [0], [1], [0, 0, 1, 1], [], []>} : vector<1x100xf32>, vector<100x800xf32>, vector<1x800xf32> -> vector<1x800xf32>
    %9 = vector.broadcast %8 : vector<1x800xf32> to vector<2x800xf32>
    %10 = arith.subf %0, %9 : vector<2x800xf32>
    %11 = arith.mulf %10, %10 : vector<2x800xf32>
    %cst_8 = arith.constant dense<0.000000e+00> : vector<800xf32>
    %12 = vector.multi_reduction <add>, %11, %cst_8 [0] : vector<2x800xf32> to vector<800xf32>
    %13 = vector.shape_cast %12 : vector<800xf32> to vector<1x800xf32>
    %cst_9 = arith.constant dense<0.000000e+00> : vector<1x100xf32>
    %14 = tpu.matmul %13, %1, %cst_9 {dimension_numbers = #tpu.dot_dimension_numbers<[1], [0], [0], [1], [0, 0, 1, 1], [], []>} : vector<1x800xf32>, vector<800x100xf32>, vector<1x100xf32> -> vector<1x100xf32>
    %cst_10 = arith.constant 6.250000e-02 : f32
    %15 = vector.broadcast %cst_10 : f32 to vector<1x100xf32>
    %16 = arith.mulf %14, %15 : vector<1x100xf32>
    %c0_11 = arith.constant 0 : index
    %c0_12 = arith.constant 0 : index
    %17 = vector.load %arg1[%c0_11, %c0_12] : memref<1x100xf32, #tpu.memory_space<vmem>>, vector<1x100xf32>
    %cst_13 = arith.constant 9.99999974E-6 : f32
    %18 = vector.broadcast %cst_13 : f32 to vector<1x100xf32>
    %19 = arith.addf %16, %18 : vector<1x100xf32>
    %20 = math.rsqrt %19 : vector<1x100xf32>
    %21 = arith.mulf %17, %20 : vector<1x100xf32>
    %cst_14 = arith.constant dense<0.000000e+00> : vector<1x800xf32>
    %22 = tpu.matmul %21, %2, %cst_14 {dimension_numbers = #tpu.dot_dimension_numbers<[1], [0], [0], [1], [0, 0, 1, 1], [], []>} : vector<1x100xf32>, vector<100x800xf32>, vector<1x800xf32> -> vector<1x800xf32>
    %c0_15 = arith.constant 0 : index
    %c0_16 = arith.constant 0 : index
    %23 = vector.load %arg2[%c0_15, %c0_16] : memref<1x100xf32, #tpu.memory_space<vmem>>, vector<1x100xf32>
    %cst_17 = arith.constant dense<0.000000e+00> : vector<1x800xf32>
    %24 = tpu.matmul %23, %2, %cst_17 {dimension_numbers = #tpu.dot_dimension_numbers<[1], [0], [0], [1], [0, 0, 1, 1], [], []>} : vector<1x100xf32>, vector<100x800xf32>, vector<1x800xf32> -> vector<1x800xf32>
    %25 = vector.broadcast %22 : vector<1x800xf32> to vector<2x800xf32>
    %26 = arith.mulf %10, %25 : vector<2x800xf32>
    %27 = vector.broadcast %24 : vector<1x800xf32> to vector<2x800xf32>
    %28 = arith.addf %26, %27 : vector<2x800xf32>
    %c0_18 = arith.constant 0 : index
    %c0_19 = arith.constant 0 : index
    %29 = vector.load %arg5[%c0_18, %c0_19] : memref<2x800xf32, #tpu.memory_space<vmem>>, vector<2x800xf32>
    tpu.vector_store %arg5[%c0_18, %c0_19], %28 {strides = array<i32>} : memref<2x800xf32, #tpu.memory_space<vmem>>, vector<2x800xf32>,
    return
  }
}

</mosaic_0001>

<bundles_post_ra>
// kernel: tpu_custom_call.1
= control target key start
LH: loop header
LB: loop body
LE: loop exit
PB: predicated region body
PF: predicated region fallthrough
CT: control target
= control target key end

     0   :  { %v3004_v47 = vmov 1983009808   ;;  %v220_v49 = vlaneseq  ;;  %vm256_vm0 = vcmask 1041408   ;;  %s4252_s0 = inlined_call_operand.vmem [shape: f32[2,800], index: 0, kind: input, shape index: {}]   ;;  %s4253_s1 = inlined_call_operand.vmem [shape: f32[1,100], index: 1, kind: input, shape index: {}]   ;;  %s4254_s2 = inlined_call_operand.vmem [shape: f32[1,100], index: 2, kind: input, shape index: {}]   ;;  %s4255_s3 = inlined_call_operand.vmem [shape: f32[800,100], index: 3, kind: input, shape index: {}]   ;;  %s4256_s4 = inlined_call_operand.vmem [shape: f32[100,800], index: 4, kind: input, shape index: {}]   ;;  %s4257_s5 = inlined_call_operand.hbm [shape: f32[2,800], index: 5, kind: output, shape index: {}]  }
   0x1   :  { %v39_v0 = vld [vmem:[%s4255_s3 + $0x80] sm:$0xff]  ;;  %v40_v1 = vld [vmem:[%s4255_s3 + $0x88] sm:$0xff]  ;;  %v41_v11 = vld [vmem:[%s4255_s3 + $0x90] sm:$0xff]  ;;  %v218_v48 = vunpack.c.l.s4 %v3004_v47 }
   0x2   :  { %v71_v2 = vld [vmem:[%s4255_s3 + $0x180] sm:$0xff]  ;;  %v3048_v3 = vpack.c.bf16 %v40_v1, %v39_v0  ;;  %v72_v4 = vld [vmem:[%s4255_s3 + $0x188] sm:$0xff]  ;;  %v42_v13 = vld [vmem:[%s4255_s3 + $0x98] sm:$0xff]  ;;  %v3215_v0 = vshrl.u32 %v220_v49, 7 }
   0x3   :  { %v23_v5 = vld [vmem:[%s4255_s3] sm:$0xff]  ;;  %v24_v6 = vld [vmem:[%s4255_s3 + $0x8] sm:$0xff]  ;;  %v3059_v7 = vpack.c.bf16 %v72_v4, %v71_v2  ;;  %v73_v14 = vld [vmem:[%s4255_s3 + $0x190] sm:$0xff]  ;;  %v3086_v16 = vpack.c.bf16 %v42_v13, %v41_v11  ;;  %v219_v63 = vunpack.c.0.s8 %v218_v48 }
   0x4   :  { %v3061_v8 = vpack.c.bf16 %v24_v6, %v23_v5  ;;  %v55_v9 = vld [vmem:[%s4255_s3 + $0x100] sm:$0xff]  ;;  %v56_v10 = vld [vmem:[%s4255_s3 + $0x108] sm:$0xff]  ;;  %2498 = vmatprep.subr.bf16.mxu0 %v3048_v3  ;;  %v74_v15 = vld [vmem:[%s4255_s3 + $0x198] sm:$0xff] }
   0x5   :  { %v3073_v12 = vpack.c.bf16 %v56_v10, %v55_v9  ;;  %2530 = vmatprep.subr.bf16.mxu1 %v3059_v7  ;;  %v3088_v17 = vpack.c.bf16 %v74_v15, %v73_v14  ;;  %v25_v18 = vld [vmem:[%s4255_s3 + $0x10] sm:$0xff]  ;;  %v26_v19 = vld [vmem:[%s4255_s3 + $0x18] sm:$0xff]  ;;  %v43_v23 = vld [vmem:[%s4255_s3 + $0xa0] sm:$0xff] }
   0x6   :  { %2500 = vmatpush3.bf16.msra.mxu0 %v3061_v8  ;;  %v57_v20 = vld [vmem:[%s4255_s3 + $0x110] sm:$0xff]  ;;  %v3100_v21 = vpack.c.bf16 %v26_v19, %v25_v18  ;;  %v58_v22 = vld [vmem:[%s4255_s3 + $0x118] sm:$0xff]  ;;  %v44_v24 = vld [vmem:[%s4255_s3 + $0xa8] sm:$0xff]  ;;  %v3254_v19 = vsub.s32 %v219_v63, %v3215_v0 }
   0x7   :  { %2532 = vmatpush3.bf16.msra.mxu1 %v3073_v12  ;;  %2502 = vmatprep.subr.bf16.mxu0 %v3086_v16  ;;  %v3113_v25 = vpack.c.bf16 %v58_v22, %v57_v20  ;;  %v3115_v26 = vpack.c.bf16 %v44_v24, %v43_v23  ;;  %v75_v27 = vld [vmem:[%s4255_s3 + $0x1a0] sm:$0xff]  ;;  %v76_v28 = vld [vmem:[%s4255_s3 + $0x1a8] sm:$0xff]  ;;  %v45_v35 = vld [vmem:[%s4255_s3 + $0xb0] sm:$0xff] }
   0x8   :  { %2534 = vmatprep.subr.bf16.mxu1 %v3088_v17  ;;  %v27_v29 = vld [vmem:[%s4255_s3 + $0x20] sm:$0xff]  ;;  %v3126_v30 = vpack.c.bf16 %v76_v28, %v75_v27  ;;  %v28_v31 = vld [vmem:[%s4255_s3 + $0x28] sm:$0xff]  ;;  %v46_v36 = vld [vmem:[%s4255_s3 + $0xb8] sm:$0xff] }
   0x9   :  { %v59_v32 = vld [vmem:[%s4255_s3 + $0x120] sm:$0xff]  ;;  %v60_v33 = vld [vmem:[%s4255_s3 + $0x128] sm:$0xff]  ;;  %v3138_v34 = vpack.c.bf16 %v28_v31, %v27_v29  ;;  %v77_v37 = vld [vmem:[%s4255_s3 + $0x1b0] sm:$0xff]  ;;  %v3153_v39 = vpack.c.bf16 %v46_v36, %v45_v35 }
   0xa   :  { %2504 = vmatpush3.bf16.msra.mxu0 %v3100_v21  ;;  %v3151_v38 = vpack.c.bf16 %v60_v33, %v59_v32  ;;  %v78_v40 = vld [vmem:[%s4255_s3 + $0x1b8] sm:$0xff]  ;;  %v29_v41 = vld [vmem:[%s4255_s3 + $0x30] sm:$0xff]  ;;  %v47_v46 = vld [vmem:[%s4255_s3 + $0xc0] sm:$0xff] }
   0xb   :  { %2536 = vmatpush3.bf16.msra.mxu1 %v3113_v25  ;;  %2506 = vmatprep.subr.bf16.mxu0 %v3115_v26  ;;  %v30_v42 = vld [vmem:[%s4255_s3 + $0x38] sm:$0xff]  ;;  %v3165_v43 = vpack.c.bf16 %v78_v40, %v77_v37  ;;  %v61_v44 = vld [vmem:[%s4255_s3 + $0x130] sm:$0xff]  ;;  %v48_v50 = vld [vmem:[%s4255_s3 + $0xc8] sm:$0xff] }
   0xc   :  { %2538 = vmatprep.subr.bf16.mxu1 %v3126_v30  ;;  %v62_v45 = vld [vmem:[%s4255_s3 + $0x138] sm:$0xff]  ;;  %v79_v51 = vld [vmem:[%s4255_s3 + $0x1c0] sm:$0xff]  ;;  %v80_v52 = vld [vmem:[%s4255_s3 + $0x1c8] sm:$0xff]  ;;  %v3186_v53 = vpack.c.bf16 %v30_v42, %v29_v41  ;;  %v3192_v55 = vpack.c.bf16 %v48_v50, %v47_v46 }
   0xd   :  { %v3190_v54 = vpack.c.bf16 %v62_v45, %v61_v44  ;;  %v31_v56 = vld [vmem:[%s4255_s3 + $0x40] sm:$0xff]  ;;  %v32_v57 = vld [vmem:[%s4255_s3 + $0x48] sm:$0xff]  ;;  %v3204_v59 = vpack.c.bf16 %v80_v52, %v79_v51  ;;  %v49_v61 = vld [vmem:[%s4255_s3 + $0xd0] sm:$0xff] }
   0xe   :  { %2508 = vmatpush3.bf16.msra.mxu0 %v3138_v34  ;;  %v63_v58 = vld [vmem:[%s4255_s3 + $0x140] sm:$0xff]  ;;  %v64_v60 = vld [vmem:[%s4255_s3 + $0x148] sm:$0xff]  ;;  %v50_v62 = vld [vmem:[%s4255_s3 + $0xd8] sm:$0xff]  ;;  %v3224_v4 = vpack.c.bf16 %v32_v57, %v31_v56 }
   0xf   :  { %2540 = vmatpush3.bf16.msra.mxu1 %v3151_v38  ;;  %2510 = vmatprep.subr.bf16.mxu0 %v3153_v39  ;;  %v81_v1 = vld [vmem:[%s4255_s3 + $0x1d0] sm:$0xff]  ;;  %v82_v2 = vld [vmem:[%s4255_s3 + $0x1d8] sm:$0xff]  ;;  %v3228_v5 = vpack.c.bf16 %v64_v60, %v63_v58  ;;  %v3230_v6 = vpack.c.bf16 %v50_v62, %v49_v61  ;;  %v51_v15 = vld [vmem:[%s4255_s3 + $0xe0] sm:$0xff] }
  0x10   :  { %2542 = vmatprep.subr.bf16.mxu1 %v3165_v43  ;;  %v33_v9 = vld [vmem:[%s4255_s3 + $0x50] sm:$0xff]  ;;  %v34_v10 = vld [vmem:[%s4255_s3 + $0x58] sm:$0xff]  ;;  %v3242_v13 = vpack.c.bf16 %v82_v2, %v81_v1  ;;  %v52_v18 = vld [vmem:[%s4255_s3 + $0xe8] sm:$0xff] }
  0x11   :  { %v65_v11 = vld [vmem:[%s4255_s3 + $0x150] sm:$0xff]  ;;  %v66_v14 = vld [vmem:[%s4255_s3 + $0x158] sm:$0xff]  ;;  %v83_v20 = vld [vmem:[%s4255_s3 + $0x1e0] sm:$0xff]  ;;  %v3263_v23 = vpack.c.bf16 %v34_v10, %v33_v9  ;;  %v3272_v28 = vpack.c.bf16 %v52_v18, %v51_v15 }
  0x12   :  { %2512 = vmatpush3.bf16.msra.mxu0 %v3186_v53  ;;  %v84_v22 = vld [vmem:[%s4255_s3 + $0x1e8] sm:$0xff]  ;;  %v35_v24 = vld [vmem:[%s4255_s3 + $0x60] sm:$0xff]  ;;  %v3270_v27 = vpack.c.bf16 %v66_v14, %v65_v11  ;;  %v53_v36 = vld [vmem:[%s4255_s3 + $0xf0] sm:$0xff] }
  0x13   :  { %2544 = vmatpush3.bf16.msra.mxu1 %v3190_v54  ;;  %2514 = vmatprep.subr.bf16.mxu0 %v3192_v55  ;;  %v36_v29 = vld [vmem:[%s4255_s3 + $0x68] sm:$0xff]  ;;  %v67_v31 = vld [vmem:[%s4255_s3 + $0x160] sm:$0xff]  ;;  %v3286_v33 = vpack.c.bf16 %v84_v22, %v83_v20  ;;  %v54_v37 = vld [vmem:[%s4255_s3 + $0xf8] sm:$0xff] }
  0x14   :  { %2546 = vmatprep.subr.bf16.mxu1 %v3204_v59  ;;  %v3283_v32 = vld [vmem:[%s4252_s0] sm:$0xff]  ;;  %v68_v35 = vld [vmem:[%s4255_s3 + $0x168] sm:$0xff]  ;;  %v85_v42 = vld [vmem:[%s4255_s3 + $0x1f0] sm:$0xff]  ;;  %v3308_v45 = vpack.c.bf16 %v36_v29, %v35_v24  ;;  %v3325_v56 = vpack.c.bf16 %v54_v37, %v53_v36 }
  0x15   :  { %v223_v40 = vrot.slane %v3283_v32, %v3254_v19  ;;  %v216_v41 = vcombine.high %v3283_v32, %v3283_v32  ;;  %v86_v44 = vld [vmem:[%s4255_s3 + $0x1f8] sm:$0xff]  ;;  %v37_v46 = vld [vmem:[%s4255_s3 + $0x70] sm:$0xff]  ;;  %v3323_v52 = vpack.c.bf16 %v68_v35, %v67_v31  ;;  %v103_v60 = vld [vmem:[%s4255_s3 + $0x280] sm:$0xff] }
  0x16   :  { %2516 = vmatpush3.bf16.msra.mxu0 %v3224_v4  ;;  %v38_v47 = vld [vmem:[%s4255_s3 + $0x78] sm:$0xff]  ;;  %v69_v48 = vld [vmem:[%s4255_s3 + $0x170] sm:$0xff]  ;;  %v104_v61 = vld [vmem:[%s4255_s3 + $0x288] sm:$0xff]  ;;  %v3337_v62 = vpack.c.bf16 %v86_v44, %v85_v42 }
  0x17   :  { %2548 = vmatpush3.bf16.msra.mxu1 %v3228_v5  ;;  %2518 = vmatprep.subr.bf16.mxu0 %v3230_v6  ;;  %v231_v49 = vcombine.high %v223_v40, %v223_v40  ;;  %v230_v50 = vrot.slane %v216_v41, %v3254_v19  ;;  %v257_v51 = vsel %vm256_vm0, %v223_v40, 0.0  ;;  %v70_v57 = vld [vmem:[%s4255_s3 + $0x178] sm:$0xff]  ;;  %v3342_v14 = vpack.c.bf16 %v38_v47, %v37_v46  ;;  %v3358_v47 = vld [vmem:[%s4252_s0 + $0x8] sm:$0x3f] }
  0x18   :  { %2550 = vmatprep.subr.bf16.mxu1 %v3242_v13  ;;  %v258_v58 = vrot.slane %v257_v51, 4  ;;  %v3344_v15 = vpack.c.bf16 %v70_v57, %v69_v48  ;;  %v3347_v20 = vpack.c.bf16 %v104_v61, %v103_v60  ;;  %v87_v48 = vld [vmem:[%s4255_s3 + $0x200] sm:$0xff]  ;;  %v240_v57 = vrot.slane %v3358_v47, %v3254_v19 }
  0x19   :  { %v264_v63 = vsel %vm256_vm0, %v231_v49, 0.0  ;;  %v232_v1 = vcombine.high %v230_v50, %v230_v50  ;;  %v271_v2 = vsel %vm256_vm0, %v230_v50, 0.0  ;;  %v88_v49 = vld [vmem:[%s4255_s3 + $0x208] sm:$0xff]  ;;  %v4258_v50 = vmov 0.0|0.0  }
  0x1a   :  { %2520 = vmatpush3.bf16.msra.mxu0 %v3263_v23  ;;  %v265_v9 = vrot.slane %v264_v63, 4  ;;  %v259_v10 = vadd.f32 %v258_v58, %v257_v51  ;;  %v272_v11 = vrot.slane %v271_v2, 4  ;;  %v233_v51 = vcombine.high %v3358_v47, %v3358_v47 }
  0x1b   :  { %2552 = vmatpush3.bf16.msra.mxu1 %v3270_v27  ;;  %2522 = vmatprep.subr.bf16.mxu0 %v3272_v28  ;;  %v278_v18 = vsel %vm256_vm0, %v232_v1, 0.0 }
  0x1c   :  { %2554 = vmatprep.subr.bf16.mxu1 %v3286_v33  ;;  %v266_v22 = vadd.f32 %v265_v9, %v264_v63  ;;  %v279_v24 = vrot.slane %v278_v18, 4  ;;  %v260_v29 = vrot.slane %v259_v10, 2  ;;  %v273_v31 = vadd.f32 %v272_v11, %v271_v2 }
  0x1e   :  { %2524 = vmatpush3.bf16.msra.mxu0 %v3308_v45  ;;  %v267_v35 = vrot.slane %v266_v22, 2  ;;  %v280_v36 = vadd.f32 %v279_v24, %v278_v18  ;;  %v261_v37 = vadd.f32 %v260_v29, %v259_v10  ;;  %v274_v40 = vrot.slane %v273_v31, 2 }
  0x1f   :  { %2556 = vmatpush3.bf16.msra.mxu1 %v3323_v52  ;;  %2526 = vmatprep.subr.bf16.mxu0 %v3325_v56 }
  0x20   :  { %2558 = vmatprep.subr.bf16.mxu1 %v3337_v62  ;;  %v268_v41 = vadd.f32 %v267_v35, %v266_v22  ;;  %v281_v42 = vrot.slane %v280_v36, 2  ;;  %v262_v44 = vrot.slane %v261_v37, 1  ;;  %v275_v46 = vadd.f32 %v274_v40, %v273_v31 }
  0x22   :  { %2528 = vmatpush3.bf16.msra.mxu0 %v3342_v14 }
  0x23   :  { %2560 = vmatpush3.bf16.msra.mxu1 %v3344_v15  ;;  %2562 = vmatprep.subr.bf16.mxu0 %v3347_v20 }
  0x24   :  { %2593 = vmatprep.subr.bf16.mxu1 %v4258_v50 }
  0x25   :  { %10 = vsyncpa [#allocation3], 0  ;;  %v269_v58 = vrot.slane %v268_v41, 1  ;;  %v282_v60 = vadd.f32 %v281_v42, %v280_v36  ;;  %v276_v61 = vrot.slane %v275_v46, 1  ;;  %v105_v63 = vld [vmem:[%s4255_s3 + $0x290] sm:$0xff]  ;;  %v106_v1 = vld [vmem:[%s4255_s3 + $0x298] sm:$0xff]  ;;  %v263_v2 = vadd.f32 %v262_v44, %v261_v37 }
  0x26   :  { %vm299_vm1 = vcmask 254976   ;;  %v119_v9 = vld [vmem:[%s4255_s3 + $0x300] sm:$0xff]  ;;  %v120_v10 = vld [vmem:[%s4255_s3 + $0x308] sm:$0xff]  ;;  %v248_v11 = vcombine.high %v240_v57, %v240_v57  ;;  %v247_v18 = vrot.slane %v233_v51, %v3254_v19  ;;  %v3384_v29 = vpack.c.bf16 %v88_v49, %v87_v48  ;;  %v89_v36 = vld [vmem:[%s4255_s3 + $0x210] sm:$0xff] }
  0x27   :  { %v270_v22 = vadd.f32 %v269_v58, %v268_v41  ;;  %v283_v24 = vrot.slane %v282_v60, 1  ;;  %v277_v31 = vadd.f32 %v276_v61, %v275_v46  ;;  %v3386_v35 = vpack.c.bf16 %v106_v1, %v105_v63  ;;  %v90_v37 = vld [vmem:[%s4255_s3 + $0x218] sm:$0xff]  ;;  %v107_v44 = vld [vmem:[%s4255_s3 + $0x2a0] sm:$0xff]  ;;  %v108_v46 = vld [vmem:[%s4255_s3 + $0x2a8] sm:$0xff] }
  0x28   :  { %v292_v40 = vsel %vm256_vm0, %v248_v11, 0.0  ;;  %v300_v42 = vsel %vm299_vm1, %v247_v18, 0.0  ;;  %v3402_v48 = vpack.c.bf16 %v120_v10, %v119_v9  ;;  %v121_v58 = vld [vmem:[%s4255_s3 + $0x310] sm:$0xff]  ;;  %v3411_v61 = vpack.c.bf16 %v90_v37, %v89_v36  ;;  %v92_v10 = vld [vmem:[%s4255_s3 + $0x228] sm:$0xff]  ;;  %v110_v18 = vld [vmem:[%s4255_s3 + $0x2b8] sm:$0xff] }
  0x29   :  { %375 = vmatprep.mubr.f32.mxu0 %v270_v22  ;;  %v284_v41 = vadd.f32 %v283_v24, %v282_v60  ;;  %v293_v49 = vrot.slane %v292_v40, 4  ;;  %v301_v51 = vrot.slane %v300_v42, 4  ;;  %v122_v60 = vld [vmem:[%s4255_s3 + $0x318] sm:$0xff]  ;;  %v3414_v9 = vpack.c.bf16 %v108_v46, %v107_v44  ;;  %v109_v11 = vld [vmem:[%s4255_s3 + $0x2b0] sm:$0xff] }
  0x2a   :  { %376 = vmatmul.mubr.f32.vlgmr.msra.gmra.mrb[0].mxu0 %v263_v2  ;;  %v91_v2 = vld [vmem:[%s4255_s3 + $0x220] sm:$0xff]  ;;  %v3429_v24 = vpack.c.bf16 %v122_v60, %v121_v58  ;;  %vm3006_vm2 = vmmov 0   ;;  %v3439_v44 = vpack.c.bf16 %v110_v18, %v109_v11  ;;  %v93_v46 = vld [vmem:[%s4255_s3 + $0x230] sm:$0xff]  ;;  %vm307_vm3 = vcmask 261120  }
  0x2b   :  { %445 = vmatprep.mubr.f32.mxu1 %v284_v41  ;;  %2564 = vmatpush3.bf16.msra.mxu0 %v3384_v29  ;;  %v294_v63 = vadd.f32 %v293_v49, %v292_v40  ;;  %v302_v1 = vadd.f32 %v301_v51, %v300_v42  ;;  %v3435_v37 = vpack.c.bf16 %v92_v10, %v91_v2  ;;  %v285_v42 = vsel %vm256_vm0, %v240_v57, 0.0  ;;  %v94_v49 = vld [vmem:[%s4255_s3 + $0x238] sm:$0xff]  ;;  %v111_v51 = vld [vmem:[%s4255_s3 + $0x2c0] sm:$0xff]  ;;  %v112_v57 = vld [vmem:[%s4255_s3 + $0x2c8] sm:$0xff] }
  0x2c   :  { %446 = vmatmul.mubr.f32.vlgmr.msra.gmra.mrb[0].mxu1 %v277_v31  ;;  %2566 = vmatprep.subr.bf16.mxu0 %v3386_v35  ;;  %v4260_v31 = vmov 0.0   ;;  %v3458_v11 = vpack.c.bf16 %v112_v57, %v111_v51  ;;  %v95_v18 = vld [vmem:[%s4255_s3 + $0x240] sm:$0xff]  ;;  %v97_v51 = vld [vmem:[%s4255_s3 + $0x250] sm:$0xff]  ;;  %v98_v57 = vld [vmem:[%s4255_s3 + $0x258] sm:$0xff]  ;;  %vm596_vm4 = vcmask 1043456   ;;  %vm592_vm5 = vcmask 818176  }
  0x2d   :  { %2595 = vmatpush3.bf16.msra.mxu1 %v3402_v48  ;;  %v295_v22 = vrot.slane %v294_v63, 2  ;;  %2396 = vmatprep.mubr.msk.f32.mxu1 %vm3006_vm2, %v4260_v31  ;;  %v303_v36 = vrot.slane %v302_v1, 2  ;;  %vm2072_vm6 = vcmask 1043458   ;;  %vm2074_vm8 = vcmask 259076  }
  0x2e   :  { %2596 = vmatprep.subr.bf16.mxu1 %v4258_v50  ;;  %vm2073_vm7 = vmor %vm2072_vm6, %vm256_vm0 }
  0x2f   :  { %2568 = vmatpush3.bf16.msra.mxu0 %v3411_v61  ;;  %v296_v40 = vadd.f32 %v295_v22, %v294_v63  ;;  %v304_v41 = vadd.f32 %v303_v36, %v302_v1  ;;  %v286_v63 = vrot.slane %v285_v42, 4  ;;  %v3455_v1 = vpack.c.bf16 %v94_v49, %v93_v46  ;;  %v96_v22 = vld [vmem:[%s4255_s3 + $0x248] sm:$0xff]  ;;  %v113_v36 = vld [vmem:[%s4255_s3 + $0x2d0] sm:$0xff]  ;;  %vm2075_vm9 = vmor %vm2074_vm8, %vm2073_vm7 }
  0x30   :  { %2570 = vmatprep.subr.bf16.mxu0 %v3414_v9  ;;  %v3475_v46 = vpack.c.bf16 %v96_v22, %v95_v18  ;;  %v100_v18 = vld [vmem:[%s4255_s3 + $0x268] sm:$0xff]  ;;  %v117_v22 = vld [vmem:[%s4255_s3 + $0x2f0] sm:$0xff] }
  0x31   :  { %v297_v58 = vrot.slane %v296_v40, 1  ;;  %2598 = vmatpush3.bf16.msra.mxu1 %v3429_v24  ;;  %v305_v60 = vrot.slane %v304_v41, 1 }
  0x32   :  { %4345 = vst [vmem:[#allocation5_spill] sm:$0xff] %v3475_v46 }
  0x33   :  { %2572 = vmatpush3.bf16.msra.mxu0 %v3435_v37  ;;  %v298_v2 = vadd.f32 %v297_v58, %v296_v40  ;;  %v306_v10 = vadd.f32 %v305_v60, %v304_v41  ;;  %v114_v40 = vld [vmem:[%s4255_s3 + $0x2d8] sm:$0xff]  ;;  %v287_v41 = vadd.f32 %v286_v63, %v285_v42  ;;  %v115_v42 = vld [vmem:[%s4255_s3 + $0x2e0] sm:$0xff]  ;;  %v116_v58 = vld [vmem:[%s4255_s3 + $0x2e8] sm:$0xff]  ;;  %v3493_v63 = vpack.c.bf16 %v98_v57, %v97_v51 }
  0x34   :  { %2574 = vmatprep.subr.bf16.mxu0 %v3439_v44  ;;  %v3478_v49 = vpack.c.bf16 %v114_v40, %v113_v36  ;;  %v118_v36 = vld [vmem:[%s4255_s3 + $0x2f8] sm:$0xff] }
  0x35   :  { %515 = vmatprep.mubr.f32.mxu0 %v298_v2  ;;  %2397 = vmatmul.mubr.msk.f32.vlgmr.msra.gmra.mrb[2].mxu1 %vm307_vm3, %v306_v10  ;;  %v288_v60 = vrot.slane %v287_v41, 2  ;;  %4347 = vst [vmem:[#allocation7_spill] sm:$0xff] %v3493_v63  ;;  %v3496_v2 = vpack.c.bf16 %v116_v58, %v115_v42  ;;  %v99_v10 = vld [vmem:[%s4255_s3 + $0x260] sm:$0xff]  ;;  %v3514_v57 = vpack.c.bf16 %v118_v36, %v117_v22  ;;  %v101_v42 = vld [vmem:[%s4255_s3 + $0x270] sm:$0xff]  ;;  %v102_v58 = vld [vmem:[%s4255_s3 + $0x278] sm:$0xff] }
  0x36   :  { %682 = vmatprep.mubr.f32.mxu1 %v4260_v31  ;;  %4346 = vst [vmem:[#allocation6_spill] sm:$0xff] %v3478_v49  ;;  %v3511_v51 = vpack.c.bf16 %v100_v18, %v99_v10  ;;  %v124_v10 = vld [vmem:[%s4256_s4 + $0x8] sm:$0xff]  ;;  %v131_v18 = vld [vmem:[%s4256_s4 + $0x40] sm:$0xff]  ;;  %v126_v22 = vld [vmem:[%s4256_s4 + $0x18] sm:$0xff] }
  0x37   :  { %2576 = vmatpush3.bf16.msra.mxu0 %v3455_v1  ;;  %4348 = vst [vmem:[#allocation8_spill] sm:$0xff] %v3496_v2  ;;  %v289_v40 = vadd.f32 %v288_v60, %v287_v41  ;;  %4350 = vst [vmem:[#allocation10_spill] sm:$0xff] %v3514_v57  ;;  %v3523_v41 = vpack.c.bf16 %v102_v58, %v101_v42  ;;  %v3537_v36 = vpack.c.bf16 %v131_v18, %v124_v10  ;;  %v130_v42 = vld [vmem:[%s4256_s4 + $0x38] sm:$0xff]  ;;  %v125_v10 = vld [vmem:[%s4256_s4 + $0x10] sm:$0xff] }
  0x38   :  { %2578 = vmatprep.subr.bf16.mxu0 %v3458_v11  ;;  %4349 = vst [vmem:[#allocation9_spill] sm:$0xff] %v3511_v51  ;;  %v132_v18 = vld [vmem:[%s4256_s4 + $0x48] sm:$0xff] }
  0x39   :  { %v290_v50 = vrot.slane %v289_v40, 1  ;;  %4351 = vst [vmem:[#allocation11_spill] sm:$0xff] %v3523_v41  ;;  %2600 = vmatprep.subr.bf16.mxu1 %v3537_v36 }
  0x3b   :  { %2580 = vmatpush3.bf16.msra.mxu0 %v3475_v46  ;;  %v291_v60 = vadd.f32 %v290_v50, %v289_v40  ;;  %v133_v50 = vld [vmem:[%s4256_s4 + $0x50] sm:$0xff]  ;;  %v123_v40 = vld [vmem:[%s4256_s4] sm:$0xff] }
  0x3c   :  { %2582 = vmatprep.subr.bf16.mxu0 %v3478_v49  ;;  %v3548_v58 = vpack.c.bf16 %v133_v50, %v126_v22  ;;  %v145_v22 = vld [vmem:[%s4256_s4 + $0xb0] sm:$0xff]  ;;  %v140_v50 = vld [vmem:[%s4256_s4 + $0x88] sm:$0xff] }
  0x3e   :  { %4352 = vst [vmem:[#allocation12_spill] sm:$0xff] %v3548_v58 }
  0x3f   :  { %2584 = vmatpush3.bf16.msra.mxu0 %v3493_v63  ;;  %v172_v63 = vld [vmem:[%s4256_s4 + $0x188] sm:$0xff] }
  0x40   :  { %2586 = vmatprep.subr.bf16.mxu0 %v3496_v2 }
  0x43   :  { %2588 = vmatpush3.bf16.msra.mxu0 %v3511_v51  ;;  %v139_v51 = vld [vmem:[%s4256_s4 + $0x80] sm:$0xff] }
  0x44   :  { %2590 = vmatprep.subr.bf16.mxu0 %v3514_v57  ;;  %v144_v57 = vld [vmem:[%s4256_s4 + $0xa8] sm:$0xff] }
  0x47   :  { %2592 = vmatpush3.bf16.msra.mxu0 %v3523_v41  ;;  %v3562_v41 = vpack.c.bf16 %v132_v18, %v125_v10  ;;  %v137_v18 = vld [vmem:[%s4256_s4 + $0x70] sm:$0xff] }
  0x48   :  { %2624 = vmatprep.subr.bf16.mxu0 %v3548_v58  ;;  %v3589_v58 = vpack.c.bf16 %v144_v57, %v137_v18  ;;  %v154_v18 = vld [vmem:[%s4256_s4 + $0xf8] sm:$0xff] }
  0x49   :  { %4354 = vst [vmem:[#allocation14_spill] sm:$0xff] %v3562_v41 }
  0x4a   :  { %516 = vmatmul.mubr.f32.vlgmr.msra.gmra.mrb[2].mxu0 %v291_v60  ;;  %v3550_v60 = vpack.c.bf16 %v130_v42, %v123_v40  ;;  %v147_v40 = vld [vmem:[%s4256_s4 + $0xc0] sm:$0xff]  ;;  %4357 = vst [vmem:[#allocation17_spill] sm:$0xff] %v3589_v58 }
  0x4b   :  { %753 = vmatprep.mubr.f32.mxu0 %v4260_v31  ;;  %v138_v31 = vld [vmem:[%s4256_s4 + $0x78] sm:$0xff]  ;;  %v3577_v10 = vpack.c.bf16 %v147_v40, %v140_v50  ;;  %2626 = vmatpush1.bf16.msra.mxu0 %v3562_v41  ;;  %v159_v50 = vld [vmem:[%s4256_s4 + $0x120] sm:$0xff]  ;;  %v161_v41 = vld [vmem:[%s4256_s4 + $0x130] sm:$0xff] }
  0x4c   :  { %4353 = vst [vmem:[#allocation13_spill] sm:$0xff] %v3550_v60  ;;  %2602 = vmatpush1.bf16.msra.mxu1 %v3550_v60  ;;  %v3575_v42 = vpack.c.bf16 %v145_v22, %v138_v31  ;;  %v146_v31 = vld [vmem:[%s4256_s4 + $0xb8] sm:$0xff]  ;;  %v152_v22 = vld [vmem:[%s4256_s4 + $0xe8] sm:$0xff]  ;;  %v151_v60 = vld [vmem:[%s4256_s4 + $0xe0] sm:$0xff]  ;;  %v3615_v2 = vpack.c.bf16 %v161_v41, %v154_v18 }
  0x4d   :  { %4356 = vst [vmem:[#allocation16_spill] sm:$0xff] %v3577_v10  ;;  %2628 = vmatprep.subr.bf16.mxu0 %v3577_v10  ;;  %v3602_v40 = vpack.c.bf16 %v146_v31, %v139_v51  ;;  %v3604_v57 = vpack.c.bf16 %v159_v50, %v152_v22  ;;  %v158_v51 = vld [vmem:[%s4256_s4 + $0x118] sm:$0xff]  ;;  %v153_v31 = vld [vmem:[%s4256_s4 + $0xf0] sm:$0xff]  ;;  %v160_v22 = vld [vmem:[%s4256_s4 + $0x128] sm:$0xff] }
  0x4e   :  { %4355 = vst [vmem:[#allocation15_spill] sm:$0xff] %v3575_v42  ;;  %2604 = vmatprep.subr.bf16.mxu1 %v3575_v42  ;;  %4360 = vst [vmem:[#allocation20_spill] sm:$0xff] %v3615_v2  ;;  %v3627_v50 = vpack.c.bf16 %v158_v51, %v151_v60  ;;  %v166_v41 = vld [vmem:[%s4256_s4 + $0x158] sm:$0xff]  ;;  %v173_v18 = vld [vmem:[%s4256_s4 + $0x190] sm:$0xff]  ;;  %v3640_v42 = vpack.c.bf16 %v160_v22, %v153_v31 }
  0x4f   :  { %4358 = vst [vmem:[#allocation18_spill] sm:$0xff] %v3602_v40  ;;  %4359 = vst [vmem:[#allocation19_spill] sm:$0xff] %v3604_v57  ;;  %v168_v10 = vld [vmem:[%s4256_s4 + $0x168] sm:$0xff]  ;;  %2630 = vmatpush1.bf16.msra.mxu0 %v3602_v40  ;;  %v3642_v60 = vpack.c.bf16 %v173_v18, %v166_v41  ;;  %v175_v51 = vld [vmem:[%s4256_s4 + $0x1a0] sm:$0xff] }
  0x50   :  { %2606 = vmatpush1.bf16.msra.mxu1 %v3589_v58  ;;  %4361 = vst [vmem:[#allocation21_spill] sm:$0xff] %v3627_v50  ;;  %4362 = vst [vmem:[#allocation22_spill] sm:$0xff] %v3640_v42  ;;  %v165_v58 = vld [vmem:[%s4256_s4 + $0x150] sm:$0xff]  ;;  %2632 = vmatprep.subr.bf16.mxu0 %v3615_v2  ;;  %v3654_v40 = vpack.c.bf16 %v175_v51, %v168_v10  ;;  %v167_v31 = vld [vmem:[%s4256_s4 + $0x160] sm:$0xff] }
  0x51   :  { %2608 = vmatprep.subr.bf16.mxu1 %v3604_v57  ;;  %4363 = vst [vmem:[#allocation23_spill] sm:$0xff] %v3642_v60  ;;  %v174_v22 = vld [vmem:[%s4256_s4 + $0x198] sm:$0xff]  ;;  %v180_v41 = vld [vmem:[%s4256_s4 + $0x1c8] sm:$0xff]  ;;  %v187_v18 = vld [vmem:[%s4256_s4 + $0x200] sm:$0xff]  ;;  %v3675_v2 = vpack.c.bf16 %v172_v63, %v165_v58 }
  0x52   :  { %4364 = vst [vmem:[#allocation24_spill] sm:$0xff] %v3654_v40  ;;  %v182_v10 = vld [vmem:[%s4256_s4 + $0x1d8] sm:$0xff]  ;;  %v189_v51 = vld [vmem:[%s4256_s4 + $0x210] sm:$0xff]  ;;  %v3679_v57 = vpack.c.bf16 %v174_v22, %v167_v31  ;;  %v3681_v49 = vpack.c.bf16 %v187_v18, %v180_v41  ;;  %v179_v63 = vld [vmem:[%s4256_s4 + $0x1c0] sm:$0xff] }
  0x53   :  { %4365 = vst [vmem:[#allocation25_spill] sm:$0xff] %v3675_v2  ;;  %2634 = vmatpush1.bf16.msra.mxu0 %v3640_v42  ;;  %v3684_v46 = vpack.c.bf16 %v189_v51, %v182_v10  ;;  %v186_v58 = vld [vmem:[%s4256_s4 + $0x1f8] sm:$0xff]  ;;  %v181_v31 = vld [vmem:[%s4256_s4 + $0x1d0] sm:$0xff]  ;;  %v188_v41 = vld [vmem:[%s4256_s4 + $0x208] sm:$0xff] }
  0x54   :  { %2610 = vmatpush1.bf16.msra.mxu1 %v3627_v50  ;;  %4366 = vst [vmem:[#allocation26_spill] sm:$0xff] %v3679_v57  ;;  %4367 = vst [vmem:[#allocation27_spill] sm:$0xff] %v3681_v49  ;;  %2636 = vmatprep.subr.bf16.mxu0 %v3654_v40  ;;  %v3699_v22 = vpack.c.bf16 %v186_v58, %v179_v63  ;;  %v3704_v18 = vpack.c.bf16 %v188_v41, %v181_v31  ;;  %v194_v10 = vld [vmem:[%s4256_s4 + $0x238] sm:$0xff]  ;;  %v201_v51 = vld [vmem:[%s4256_s4 + $0x270] sm:$0xff] }
  0x55   :  { %2612 = vmatprep.subr.bf16.mxu1 %v3642_v60  ;;  %4368 = vst [vmem:[#allocation28_spill] sm:$0xff] %v3684_v46  ;;  %v196_v63 = vld [vmem:[%s4256_s4 + $0x248] sm:$0xff]  ;;  %v3717_v58 = vpack.c.bf16 %v201_v51, %v194_v10  ;;  %v203_v31 = vld [vmem:[%s4256_s4 + $0x280] sm:$0xff]  ;;  %v193_v41 = vld [vmem:[%s4256_s4 + $0x230] sm:$0xff] }
  0x56   :  { %4369 = vst [vmem:[#allocation29_spill] sm:$0xff] %v3699_v22  ;;  %4370 = vst [vmem:[#allocation30_spill] sm:$0xff] %v3704_v18  ;;  %v195_v10 = vld [vmem:[%s4256_s4 + $0x240] sm:$0xff]  ;;  %v202_v51 = vld [vmem:[%s4256_s4 + $0x278] sm:$0xff] }
  0x57   :  { %2638 = vmatpush1.bf16.msra.mxu0 %v3679_v57  ;;  %4371 = vst [vmem:[#allocation31_spill] sm:$0xff] %v3717_v58  ;;  %v3728_v57 = vpack.c.bf16 %v203_v31, %v196_v63  ;;  %v3752_v63 = vld [vmem:[%s4256_s4 + $0x2b8] sm:$0xf]  ;;  %v128_v31 = vld [vmem:[%s4256_s4 + $0x28] sm:$0xff] }
  0x58   :  { %2614 = vmatpush1.bf16.msra.mxu1 %v3675_v2  ;;  %2640 = vmatprep.subr.bf16.mxu0 %v3684_v46  ;;  %v200_v46 = vld [vmem:[%s4256_s4 + $0x268] sm:$0xff]  ;;  %4376 = vst [vmem:[#allocation36_spill] sm:$0xff] %v3752_v63 }
  0x59   :  { %2616 = vmatprep.subr.bf16.mxu1 %v3681_v49  ;;  %4372 = vst [vmem:[#allocation32_spill] sm:$0xff] %v3728_v57 }
  0x5b   :  { %2642 = vmatpush1.bf16.msra.mxu0 %v3704_v18  ;;  %v3739_v18 = vpack.c.bf16 %v202_v51, %v195_v10  ;;  %v3769_v10 = vld [vmem:[%s4256_s4 + $0x2b0] sm:$0xf]  ;;  %v135_v51 = vld [vmem:[%s4256_s4 + $0x60] sm:$0xff] }
  0x5c   :  { %2618 = vmatpush1.bf16.msra.mxu1 %v3699_v22  ;;  %v3730_v22 = vpack.c.bf16 %v200_v46, %v193_v41  ;;  %2644 = vmatprep.subr.bf16.mxu0 %v3728_v57  ;;  %v3747_v46 = vld [vmem:[%s4256_s4 + $0x2a8] sm:$0xf]  ;;  %v3764_v41 = vld [vmem:[%s4256_s4 + $0x2a0] sm:$0xf]  ;;  %4378 = vst [vmem:[#allocation38_spill] sm:$0xff] %v3769_v10 }
  0x5d   :  { %2620 = vmatprep.subr.bf16.mxu1 %v3717_v58  ;;  %4374 = vst [vmem:[#allocation34_spill] sm:$0xff] %v3739_v18  ;;  %4375 = vst [vmem:[#allocation35_spill] sm:$0xff] %v3747_v46 }
  0x5e   :  { %4373 = vst [vmem:[#allocation33_spill] sm:$0xff] %v3730_v22  ;;  %4377 = vst [vmem:[#allocation37_spill] sm:$0xff] %v3764_v41 }
  0x5f   :  { %2646 = vmatpush1.bf16.msra.mxu0 %v3739_v18  ;;  %v3776_v18 = vpack.c.bf16 %v135_v51, %v128_v31  ;;  %v127_v51 = vld [vmem:[%s4256_s4 + $0x20] sm:$0xff] }
  0x60   :  { %2622 = vmatpush1.bf16.msra.mxu1 %v3730_v22  ;;  %2095 = vmatprep.subr.msk.mxu0 %vm596_vm4, %v3752_v63  ;;  %v4380_v63 = vmov 0.0|0.0  }
  0x61   :  { %2092 = vmatprep.subr.msk.mxu1 %vm596_vm4, %v3747_v46  ;;  %4379 = vst [vmem:[#allocation39_spill] sm:$0xff] %v3776_v18 }
  0x63   :  { %2096 = vmatpush1.msk.msra.mxu0 %vm596_vm4, %v3769_v10 }
  0x64   :  { %2093 = vmatpush1.msk.msra.mxu1 %vm596_vm4, %v3764_v41  ;;  %2671 = vmatprep.subr.bf16.mxu0 %v4380_v63 }
  0x65   :  { %2648 = vmatprep.subr.bf16.mxu1 %v3776_v18  ;;  %v134_v18 = vld [vmem:[%s4256_s4 + $0x58] sm:$0xff] }
  0xfd   :  { %v2158_v57 = vpop.f32.mrb[0].mxu0 }
  0xfe   :  { %v2159_v46 = vpop.f32.mrb[1].mxu0 }
  0xff   :  { %v2193_v22 = vpop.f32.mrb[0].mxu1  ;;  %v2160_v58 = vadd.f32 %v2159_v46, %v2158_v57  ;;  %v129_v57 = vld [vmem:[%s4256_s4 + $0x30] sm:$0xff] }
 0x100   :  { %v2194_v40 = vpop.f32.mrb[1].mxu1 }
 0x101   :  { %v2195_v42 = vadd.f32 %v2194_v40, %v2193_v22  ;;  %v142_v40 = vld [vmem:[%s4256_s4 + $0x98] sm:$0xff] }
 0x103   :  { %v448_v49 = vadd.f32 %v2195_v42, %v2160_v58  ;;  %v136_v42 = vld [vmem:[%s4256_s4 + $0x68] sm:$0xff]  ;;  %v141_v58 = vld [vmem:[%s4256_s4 + $0x90] sm:$0xff] }
 0x104   :  { %v3802_v22 = vpack.c.bf16 %v136_v42, %v129_v57 }
 0x106   :  { %4382 = vst [vmem:[#allocation41_spill] sm:$0xff] %v3802_v22 }
 0x108   :  { %v587_v2 = vpop.f32.mrb[2].mxu1 }
 0x109   :  { %v2398_v60 = vpop.f32.mrb[3].mxu1 }
 0x10a   :  { %v3800_v60 = vpack.c.bf16 %v134_v18, %v127_v51  ;;  %v150_v18 = vld [vmem:[%s4256_s4 + $0xd8] sm:$0xff]  ;;  %v163_v51 = vld [vmem:[%s4256_s4 + $0x140] sm:$0xff] }
 0x10c   :  { %4381 = vst [vmem:[#allocation40_spill] sm:$0xff] %v3800_v60 }
 0x11d   :  { %v2228_v50 = vpop.f32.mrb[2].mxu0 }
 0x11e   :  { %v2229_v41 = vpop.f32.mrb[3].mxu0 }
 0x11f   :  { %v2230_v31 = vadd.f32 %v2229_v41, %v2228_v50 }
 0x121   :  { %v518_v10 = vadd.f32 %v2230_v31, %v448_v49  ;;  %v149_v49 = vld [vmem:[%s4256_s4 + $0xd0] sm:$0xff]  ;;  %v148_v31 = vld [vmem:[%s4256_s4 + $0xc8] sm:$0xff] }
 0x122   :  { %v3809_v41 = vpack.c.bf16 %v149_v49, %v142_v40  ;;  %v3832_v57 = vpack.c.bf16 %v148_v31, %v141_v58  ;;  %v155_v40 = vld [vmem:[%s4256_s4 + $0x100] sm:$0xff]  ;;  %v157_v58 = vld [vmem:[%s4256_s4 + $0x110] sm:$0xff]  ;;  %v164_v31 = vld [vmem:[%s4256_s4 + $0x148] sm:$0xff] }
 0x123   :  { %v588_v50 = vadd.f32 %v587_v2, %v518_v10  ;;  %v143_v2 = vld [vmem:[%s4256_s4 + $0xa0] sm:$0xff]  ;;  %v156_v10 = vld [vmem:[%s4256_s4 + $0x108] sm:$0xff] }
 0x124   :  { %4383 = vst [vmem:[#allocation42_spill] sm:$0xff] %v3809_v41  ;;  %4384 = vst [vmem:[#allocation43_spill] sm:$0xff] %v3832_v57  ;;  %v3834_v42 = vpack.c.bf16 %v150_v18, %v143_v2  ;;  %v3841_v49 = vpack.c.bf16 %v163_v51, %v156_v10  ;;  %v170_v2 = vld [vmem:[%s4256_s4 + $0x178] sm:$0xff]  ;;  %v177_v18 = vld [vmem:[%s4256_s4 + $0x1b0] sm:$0xff]  ;;  %v4387_v10 = vmov 0.0  }
 0x125   :  { %v3807_v46 = vmul.f32 0.0625, %v588_v50  ;;  %v162_v50 = vld [vmem:[%s4256_s4 + $0x138] sm:$0xff] }
 0x126   :  { %4385 = vst [vmem:[#allocation44_spill] sm:$0xff] %v3834_v42  ;;  %4386 = vst [vmem:[#allocation45_spill] sm:$0xff] %v3841_v49  ;;  %v3863_v51 = vpack.c.bf16 %v162_v50, %v155_v40  ;;  %v171_v40 = vld [vmem:[%s4256_s4 + $0x180] sm:$0xff]  ;;  %v178_v50 = vld [vmem:[%s4256_s4 + $0x1b8] sm:$0xff] }
 0x127   :  { %2094 = vmatmul.mubr.msk.f32.vlgmr.msra.gmra.mrb[4].mxu1 %vm592_vm5, %v3807_v46  ;;  %2097 = vmatmul.mubr.msk.f32.vlgmr.msra.gmra.mrb[4].mxu0 %vm592_vm5, %v3807_v46 }
 0x128   :  { %2650 = vmatpush1.bf16.msra.mxu1 %v3800_v60  ;;  %2673 = vmatpush3.bf16.msra.mxu0 %v3802_v22  ;;  %4388 = vst [vmem:[#allocation46_spill] sm:$0xff] %v3863_v51  ;;  %v169_v22 = vld [vmem:[%s4256_s4 + $0x170] sm:$0xff]  ;;  %v3872_v60 = vpack.c.bf16 %v177_v18, %v170_v2  ;;  %v3893_v18 = vpack.c.bf16 %v178_v50, %v171_v40  ;;  %v198_v40 = vld [vmem:[%s4256_s4 + $0x258] sm:$0xff] }
 0x129   :  { %2652 = vmatprep.subr.bf16.mxu1 %v3809_v41  ;;  %2674 = vmatprep.subr.bf16.mxu0 %v4380_v63  ;;  %v3865_v41 = vpack.c.bf16 %v164_v31, %v157_v58  ;;  %v184_v58 = vld [vmem:[%s4256_s4 + $0x1e8] sm:$0xff]  ;;  %v191_v31 = vld [vmem:[%s4256_s4 + $0x220] sm:$0xff]  ;;  %v205_v50 = vld [vmem:[%s4256_s4 + $0x290] sm:$0xff] }
 0x12a   :  { %824 = vmatprep.mubr.f32.mxu1 %v4387_v10  ;;  %2425 = vmatprep.mubr.msk.f32.mxu0 %vm3006_vm2, %v4387_v10  ;;  %4390 = vst [vmem:[#allocation48_spill] sm:$0xff] %v3872_v60 }
 0x12b   :  { %4389 = vst [vmem:[#allocation47_spill] sm:$0xff] %v3865_v41 }
 0x12c   :  { %2654 = vmatpush1.bf16.msra.mxu1 %v3832_v57  ;;  %2676 = vmatpush3.bf16.msra.mxu0 %v3834_v42  ;;  %v176_v57 = vld [vmem:[%s4256_s4 + $0x1a8] sm:$0xff]  ;;  %v3900_v42 = vpack.c.bf16 %v191_v31, %v184_v58 }
 0x12d   :  { %2656 = vmatprep.subr.bf16.mxu1 %v3841_v49  ;;  %2677 = vmatprep.subr.bf16.mxu0 %v4380_v63  ;;  %v3891_v2 = vpack.c.bf16 %v176_v57, %v169_v22  ;;  %v183_v49 = vld [vmem:[%s4256_s4 + $0x1e0] sm:$0xff]  ;;  %v185_v22 = vld [vmem:[%s4256_s4 + $0x1f0] sm:$0xff]  ;;  %v192_v57 = vld [vmem:[%s4256_s4 + $0x228] sm:$0xff] }
 0x12e   :  { %v3921_v31 = vpack.c.bf16 %v192_v57, %v185_v22 }
 0x12f   :  { %4391 = vst [vmem:[#allocation49_spill] sm:$0xff] %v3891_v2 }
 0x130   :  { %2658 = vmatpush1.bf16.msra.mxu1 %v3863_v51  ;;  %2679 = vmatpush3.bf16.msra.mxu0 %v3865_v41  ;;  %v190_v51 = vld [vmem:[%s4256_s4 + $0x218] sm:$0xff]  ;;  %v3928_v41 = vpack.c.bf16 %v205_v50, %v198_v40  ;;  %v3950_v40 = vld [vmem:[%s4256_s4 + $0x2c8] sm:$0xf] }
 0x131   :  { %2660 = vmatprep.subr.bf16.mxu1 %v3872_v60  ;;  %2680 = vmatprep.subr.bf16.mxu0 %v4380_v63  ;;  %v3919_v58 = vpack.c.bf16 %v190_v51, %v183_v49  ;;  %v197_v60 = vld [vmem:[%s4256_s4 + $0x250] sm:$0xff]  ;;  %v199_v49 = vld [vmem:[%s4256_s4 + $0x260] sm:$0xff]  ;;  %v206_v51 = vld [vmem:[%s4256_s4 + $0x298] sm:$0xff] }
 0x132   :  { %v3943_v57 = vpack.c.bf16 %v206_v51, %v199_v49 }
 0x134   :  { %2662 = vmatpush1.bf16.msra.mxu1 %v3891_v2  ;;  %2682 = vmatpush3.bf16.msra.mxu0 %v3893_v18  ;;  %v204_v2 = vld [vmem:[%s4256_s4 + $0x288] sm:$0xff] }
 0x135   :  { %2664 = vmatprep.subr.bf16.mxu1 %v3900_v42  ;;  %2683 = vmatprep.subr.bf16.mxu0 %v4380_v63  ;;  %v3941_v22 = vpack.c.bf16 %v204_v2, %v197_v60  ;;  %v3960_v60 = vld [vmem:[%s4256_s4 + $0x2c0] sm:$0xf]  ;;  %v3965_v2 = vld [vmem:[%s4256_s4 + $0x2d0] sm:$0xf] }
 0x138   :  { %2666 = vmatpush1.bf16.msra.mxu1 %v3919_v58  ;;  %2685 = vmatpush3.bf16.msra.mxu0 %v3921_v31 }
 0x139   :  { %2668 = vmatprep.subr.bf16.mxu1 %v3928_v41  ;;  %2686 = vmatprep.subr.bf16.mxu0 %v4380_v63 }
 0x13c   :  { %2670 = vmatpush1.bf16.msra.mxu1 %v3941_v22  ;;  %2688 = vmatpush3.bf16.msra.mxu0 %v3943_v57 }
 0x13d   :  { %2098 = vmatprep.subr.msk.mxu1 %vm596_vm4, %v3950_v40  ;;  %2423 = vmatprep.subr.mxu0 %v4387_v10 }
 0x140   :  { %2099 = vmatpush1.msk.msra.mxu1 %vm596_vm4, %v3960_v60  ;;  %2424 = vmatpush3.msk.msra.mxu0 %vm596_vm4, %v3965_v2 }
 0x141   :  { %2100 = vmatmul.mubr.msk.f32.vlgmr.msra.gmra.mrb[6].mxu1 %vm592_vm5, %v3807_v46  ;;  %2426 = vmatmul.mubr.msk.f32.vlgmr.msra.gmra.mrb[6].mxu0 %vm592_vm5, %v3807_v46 }
 0x142   :  { %2690 = vmatprep.subr.bf16.mxu1 %v3048_v3  ;;  %2722 = vmatprep.subr.bf16.mxu0 %v3059_v7  ;;  %v4010_v3 = vsub.s32 0, %v3215_v0 }
 0x143   :  { %2692 = vmatpush3.bf16.msra.mxu1 %v3061_v8  ;;  %2724 = vmatpush3.bf16.msra.mxu0 %v3073_v12 }
 0x144   :  { %2694 = vmatprep.subr.bf16.mxu1 %v3086_v16  ;;  %2726 = vmatprep.subr.bf16.mxu0 %v3088_v17 }
 0x147   :  { %2696 = vmatpush3.bf16.msra.mxu1 %v3100_v21  ;;  %2728 = vmatpush3.bf16.msra.mxu0 %v3113_v25 }
 0x148   :  { %2698 = vmatprep.subr.bf16.mxu1 %v3115_v26  ;;  %2730 = vmatprep.subr.bf16.mxu0 %v3126_v30 }
 0x14b   :  { %2700 = vmatpush3.bf16.msra.mxu1 %v3138_v34  ;;  %2732 = vmatpush3.bf16.msra.mxu0 %v3151_v38 }
 0x14c   :  { %2702 = vmatprep.subr.bf16.mxu1 %v3153_v39  ;;  %2734 = vmatprep.subr.bf16.mxu0 %v3165_v43 }
 0x14f   :  { %2704 = vmatpush3.bf16.msra.mxu1 %v3186_v53  ;;  %2736 = vmatpush3.bf16.msra.mxu0 %v3190_v54 }
 0x150   :  { %2706 = vmatprep.subr.bf16.mxu1 %v3192_v55  ;;  %2738 = vmatprep.subr.bf16.mxu0 %v3204_v59 }
 0x153   :  { %2708 = vmatpush3.bf16.msra.mxu1 %v3224_v4  ;;  %2740 = vmatpush3.bf16.msra.mxu0 %v3228_v5 }
 0x154   :  { %2710 = vmatprep.subr.bf16.mxu1 %v3230_v6  ;;  %2742 = vmatprep.subr.bf16.mxu0 %v3242_v13 }
 0x157   :  { %2712 = vmatpush3.bf16.msra.mxu1 %v3263_v23  ;;  %2744 = vmatpush3.bf16.msra.mxu0 %v3270_v27 }
 0x158   :  { %2714 = vmatprep.subr.bf16.mxu1 %v3272_v28  ;;  %2746 = vmatprep.subr.bf16.mxu0 %v3286_v33 }
 0x15b   :  { %2716 = vmatpush3.bf16.msra.mxu1 %v3308_v45  ;;  %2748 = vmatpush3.bf16.msra.mxu0 %v3323_v52 }
 0x15c   :  { %2718 = vmatprep.subr.bf16.mxu1 %v3325_v56  ;;  %2750 = vmatprep.subr.bf16.mxu0 %v3337_v62 }
 0x15f   :  { %2720 = vmatpush3.bf16.msra.mxu1 %v3342_v14  ;;  %2752 = vmatpush3.bf16.msra.mxu0 %v3344_v15 }
 0x160   :  { %2754 = vmatprep.subr.bf16.mxu1 %v3347_v20  ;;  %2785 = vmatprep.subr.bf16.mxu0 %v4380_v63 }
 0x1fa   :  { %v684_v7 = vpop.f32.mrb[4].mxu1  ;;  %v755_v8 = vpop.f32.mrb[4].mxu0 }
 0x1fb   :  { %v904_v12 = vrot.slane %v684_v7, %v4010_v3  ;;  %v912_v16 = vrot.slane %v755_v8, %v4010_v3  ;;  %v686_v17 = vpop.f32.mrb[5].mxu1  ;;  %v757_v21 = vpop.f32.mrb[5].mxu0 }
 0x1fc   :  { %v908_v25 = vrot.slane %v686_v17, %v4010_v3  ;;  %v916_v26 = vrot.slane %v757_v21, %v4010_v3 }
 0x1fe   :  { %v936_v30 = vcombine.low %v904_v12, %v908_v25  ;;  %v937_v34 = vcombine.low %v912_v16, %v916_v26 }
 0x200   :  { %v944_v38 = vrot.slane %v936_v30, %v3254_v19  ;;  %v951_v39 = vrot.slane %v937_v34, %v3254_v19 }
 0x202   :  { %v952_v43 = vcombine.low %v944_v38, %v951_v39 }
 0x204   :  { %v4019_v53 = vsub.f32 %v3283_v32, %v952_v43 }
 0x206   :  { %v973_v54 = vmul.f32 %v4019_v53, %v4019_v53 }
 0x208   :  { %v977_v55 = vcombine.high %v973_v54, %v973_v54  ;;  %v984_v59 = vrot.slane %v973_v54, %v3254_v19 }
 0x20a   :  { %v992_v0 = vcombine.high %v984_v59, %v984_v59  ;;  %v1017_v4 = vsel %vm256_vm0, %v984_v59, 0.0  ;;  %v991_v5 = vrot.slane %v977_v55, %v3254_v19 }
 0x20b   :  { %v1018_v6 = vrot.slane %v1017_v4, 4 }
 0x20c   :  { %v1024_v13 = vsel %vm256_vm0, %v992_v0, 0.0  ;;  %v993_v23 = vcombine.high %v991_v5, %v991_v5  ;;  %v1031_v27 = vsel %vm256_vm0, %v991_v5, 0.0 }
 0x20d   :  { %v1025_v28 = vrot.slane %v1024_v13, 4  ;;  %v1019_v32 = vadd.f32 %v1018_v6, %v1017_v4  ;;  %v1032_v33 = vrot.slane %v1031_v27, 4 }
 0x20e   :  { %v1038_v45 = vsel %vm256_vm0, %v993_v23, 0.0 }
 0x20f   :  { %v1026_v52 = vadd.f32 %v1025_v28, %v1024_v13  ;;  %v1020_v56 = vrot.slane %v1019_v32, 2  ;;  %v1039_v62 = vrot.slane %v1038_v45, 4  ;;  %v1033_v14 = vadd.f32 %v1032_v33, %v1031_v27 }
 0x211   :  { %v1027_v15 = vrot.slane %v1026_v52, 2  ;;  %v1021_v20 = vadd.f32 %v1020_v56, %v1019_v32  ;;  %v1040_v46 = vadd.f32 %v1039_v62, %v1038_v45  ;;  %v1034_v50 = vrot.slane %v1033_v14, 2  ;;  %v4392_v56 = vld [vmem:[#allocation5_spill] sm:$0xff] }
 0x213   :  { %v1028_v49 = vadd.f32 %v1027_v15, %v1026_v52  ;;  %v1041_v51 = vrot.slane %v1040_v46, 2  ;;  %v1035_v7 = vadd.f32 %v1034_v50, %v1033_v14  ;;  %v1022_v16 = vrot.slane %v1021_v20, 1  ;;  %v4393_v14 = vld [vmem:[#allocation6_spill] sm:$0xff]  ;;  %v4394_v50 = vld [vmem:[#allocation7_spill] sm:$0xff] }
 0x214   :  { %v826_v8 = vpop.f32.mrb[6].mxu1  ;;  %v897_v12 = vpop.f32.mrb[6].mxu0 }
 0x215   :  { %v920_v17 = vrot.slane %v826_v8, %v4010_v3  ;;  %v828_v21 = vpop.f32.mrb[7].mxu1  ;;  %v2427_v25 = vpop.f32.mrb[7].mxu0  ;;  %v1029_v26 = vrot.slane %v1028_v49, 1  ;;  %v928_v30 = vrot.slane %v897_v12, %v4010_v3  ;;  %v1042_v38 = vadd.f32 %v1041_v51, %v1040_v46  ;;  %v4396_v12 = vld [vmem:[#allocation9_spill] sm:$0xff] }
 0x216   :  { %v924_v34 = vrot.slane %v828_v21, %v4010_v3  ;;  %v1036_v43 = vrot.slane %v1035_v7, 1  ;;  %v1023_v55 = vadd.f32 %v1022_v16, %v1021_v20  ;;  %v4397_v16 = vld [vmem:[#allocation10_spill] sm:$0xff]  ;;  %v4398_v21 = vld [vmem:[#allocation13_spill] sm:$0xff]  ;;  %v4399_v25 = vld [vmem:[#allocation15_spill] sm:$0xff] }
 0x217   :  { %v1030_v39 = vadd.f32 %v1029_v26, %v1028_v49  ;;  %v1043_v59 = vrot.slane %v1042_v38, 1  ;;  %v967_v0 = vrot.slane %v928_v30, %v3254_v19  ;;  %v4400_v26 = vld [vmem:[#allocation11_spill] sm:$0xff] }
 0x218   :  { %v953_v54 = vcombine.low %v920_v17, %v924_v34  ;;  %v1037_v6 = vadd.f32 %v1036_v43, %v1035_v7  ;;  %v4401_v34 = vld [vmem:[#allocation12_spill] sm:$0xff]  ;;  %v4404_v43 = vld [vmem:[#allocation14_spill] sm:$0xff] }
 0x219   :  { %1133 = vmatprep.mubr.f32.mxu1 %v1030_v39  ;;  %v1044_v5 = vadd.f32 %v1043_v59, %v1042_v38  ;;  %v4402_v38 = vld [vmem:[#allocation17_spill] sm:$0xff]  ;;  %v4403_v39 = vld [vmem:[#allocation19_spill] sm:$0xff] }
 0x21a   :  { %v960_v4 = vrot.slane %v953_v54, %v3254_v19  ;;  %1134 = vmatmul.mubr.f32.vlgmr.msra.gmra.mrb[8].mxu1 %v1023_v55  ;;  %v4405_v54 = vld [vmem:[#allocation16_spill] sm:$0xff]  ;;  %v4406_v55 = vld [vmem:[#allocation21_spill] sm:$0xff]  ;;  %v4407_v59 = vld [vmem:[#allocation23_spill] sm:$0xff] }
 0x21b   :  { %2756 = vmatpush3.bf16.msra.mxu1 %v3384_v29  ;;  %1203 = vmatprep.mubr.f32.mxu0 %v1044_v5  ;;  %v4410_v5 = vld [vmem:[#allocation25_spill] sm:$0xff] }
 0x21c   :  { %v968_v13 = vcombine.low %v960_v4, %v967_v0  ;;  %2758 = vmatprep.subr.bf16.mxu1 %v3386_v35  ;;  %1204 = vmatmul.mubr.f32.vlgmr.msra.gmra.mrb[8].mxu0 %v1037_v6  ;;  %v4408_v0 = vld [vmem:[#allocation18_spill] sm:$0xff]  ;;  %v4409_v4 = vld [vmem:[#allocation20_spill] sm:$0xff]  ;;  %v4411_v6 = vld [vmem:[#allocation27_spill] sm:$0xff] }
 0x21d   :  { %2787 = vmatpush3.bf16.msra.mxu0 %v3402_v48  ;;  %2436 = vmatprep.mubr.msk.f32.mxu0 %vm3006_vm2, %v4387_v10 }
 0x21e   :  { %v4037_v23 = vsub.f32 %v3358_v47, %v968_v13  ;;  %2788 = vmatprep.subr.bf16.mxu0 %v4380_v63  ;;  %v4412_v13 = vld [vmem:[#allocation22_spill] sm:$0xff] }
 0x21f   :  { %2760 = vmatpush3.bf16.msra.mxu1 %v3411_v61 }
 0x220   :  { %v974_v29 = vmul.f32 %v4037_v23, %v4037_v23  ;;  %2762 = vmatprep.subr.bf16.mxu1 %v3414_v9 }
 0x221   :  { %2790 = vmatpush3.bf16.msra.mxu0 %v3429_v24 }
 0x222   :  { %v994_v27 = vcombine.high %v974_v29, %v974_v29  ;;  %v1001_v35 = vrot.slane %v974_v29, %v3254_v19  ;;  %2792 = vmatprep.subr.bf16.mxu0 %v3537_v36  ;;  %v4413_v29 = vld [vmem:[#allocation24_spill] sm:$0xff] }
 0x223   :  { %2764 = vmatpush3.bf16.msra.mxu1 %v3435_v37 }
 0x224   :  { %v1008_v47 = vrot.slane %v994_v27, %v3254_v19  ;;  %2766 = vmatprep.subr.bf16.mxu1 %v3439_v44  ;;  %v1009_v48 = vcombine.high %v1001_v35, %v1001_v35  ;;  %v1045_v61 = vsel %vm256_vm0, %v1001_v35, 0.0  ;;  %v4414_v27 = vld [vmem:[#allocation29_spill] sm:$0xff]  ;;  %v4415_v35 = vld [vmem:[#allocation31_spill] sm:$0xff] }
 0x225   :  { %v1046_v28 = vrot.slane %v1045_v61, 4 }
 0x226   :  { %v1059_v32 = vsel %vm299_vm1, %v1008_v47, 0.0  ;;  %v1052_v9 = vsel %vm256_vm0, %v1009_v48, 0.0  ;;  %v4416_v47 = vld [vmem:[#allocation26_spill] sm:$0xff]  ;;  %v4417_v48 = vld [vmem:[#allocation28_spill] sm:$0xff] }
 0x227   :  { %v1060_v33 = vrot.slane %v1059_v32, 4  ;;  %2768 = vmatpush3.bf16.msra.mxu1 %v3455_v1  ;;  %v1053_v24 = vrot.slane %v1052_v9, 4  ;;  %v1047_v37 = vadd.f32 %v1046_v28, %v1045_v61  ;;  %v4395_v1 = vld [vmem:[#allocation8_spill] sm:$0xff]  ;;  %v4418_v61 = vld [vmem:[#allocation33_spill] sm:$0xff]  ;;  %v4419_v28 = vld [vmem:[#allocation35_spill] sm:$0xff] }
 0x228   :  { %2770 = vmatprep.subr.bf16.mxu1 %v3458_v11 }
 0x229   :  { %v1054_v45 = vadd.f32 %v1053_v24, %v1052_v9  ;;  %v1061_v52 = vadd.f32 %v1060_v33, %v1059_v32  ;;  %v1048_v15 = vrot.slane %v1047_v37, 2  ;;  %v4420_v32 = vld [vmem:[#allocation30_spill] sm:$0xff]  ;;  %v4421_v9 = vld [vmem:[#allocation32_spill] sm:$0xff]  ;;  %v4422_v33 = vld [vmem:[#allocation37_spill] sm:$0xff] }
 0x22a   :  { %v4423_v24 = vld [vmem:[#allocation39_spill] sm:$0xff] }
 0x22b   :  { %2772 = vmatpush3.bf16.msra.mxu1 %v4392_v56  ;;  %v1055_v44 = vrot.slane %v1054_v45, 2  ;;  %v1062_v62 = vrot.slane %v1061_v52, 2  ;;  %v1049_v7 = vadd.f32 %v1048_v15, %v1047_v37  ;;  %v4424_v37 = vld [vmem:[#allocation34_spill] sm:$0xff] }
 0x22c   :  { %2774 = vmatprep.subr.bf16.mxu1 %v4393_v14 }
 0x22d   :  { %v1056_v20 = vadd.f32 %v1055_v44, %v1054_v45  ;;  %v1063_v46 = vadd.f32 %v1062_v62, %v1061_v52  ;;  %v1050_v17 = vrot.slane %v1049_v7, 1  ;;  %v4425_v45 = vld [vmem:[#allocation36_spill] sm:$0xff]  ;;  %v4426_v52 = vld [vmem:[#allocation38_spill] sm:$0xff] }
 0x22f   :  { %2776 = vmatpush3.bf16.msra.mxu1 %v4394_v50  ;;  %v1057_v49 = vrot.slane %v1056_v20, 1  ;;  %v1064_v51 = vrot.slane %v1063_v46, 1  ;;  %v1051_v30 = vadd.f32 %v1050_v17, %v1049_v7  ;;  %v1350_v17 = vld [vmem:[%s4253_s1] sm:$0x1] }
 0x230   :  { %2778 = vmatprep.subr.bf16.mxu1 %v4395_v1 }
 0x231   :  { %v1058_v11 = vadd.f32 %v1057_v49, %v1056_v20  ;;  %v1065_v8 = vadd.f32 %v1064_v51, %v1063_v46 }
 0x233   :  { %2780 = vmatpush3.bf16.msra.mxu1 %v4396_v12  ;;  %1273 = vmatprep.mubr.f32.mxu1 %v1058_v11 }
 0x234   :  { %2437 = vmatmul.mubr.msk.f32.vlgmr.msra.gmra.mrb[10].mxu0 %vm307_vm3, %v1065_v8  ;;  %2782 = vmatprep.subr.bf16.mxu1 %v4397_v16 }
 0x235   :  { %2794 = vmatpush1.bf16.msra.mxu0 %v4398_v21  ;;  %1421 = vmatprep.mubr.f32.mxu0 %v4387_v10 }
 0x236   :  { %2796 = vmatprep.subr.bf16.mxu0 %v4399_v25 }
 0x237   :  { %2784 = vmatpush3.bf16.msra.mxu1 %v4400_v26 }
 0x238   :  { %2816 = vmatprep.subr.bf16.mxu1 %v4401_v34 }
 0x239   :  { %2798 = vmatpush1.bf16.msra.mxu0 %v4402_v38 }
 0x23a   :  { %1274 = vmatmul.mubr.f32.vlgmr.msra.gmra.mrb[10].mxu1 %v1051_v30  ;;  %2800 = vmatprep.subr.bf16.mxu0 %v4403_v39 }
 0x23b   :  { %2818 = vmatpush1.bf16.msra.mxu1 %v4404_v43  ;;  %1492 = vmatprep.mubr.f32.mxu1 %v4387_v10 }
 0x23c   :  { %2820 = vmatprep.subr.bf16.mxu1 %v4405_v54 }
 0x23d   :  { %2802 = vmatpush1.bf16.msra.mxu0 %v4406_v55 }
 0x23e   :  { %2804 = vmatprep.subr.bf16.mxu0 %v4407_v59 }
 0x23f   :  { %2822 = vmatpush1.bf16.msra.mxu1 %v4408_v0 }
 0x240   :  { %2824 = vmatprep.subr.bf16.mxu1 %v4409_v4 }
 0x241   :  { %2806 = vmatpush1.bf16.msra.mxu0 %v4410_v5 }
 0x242   :  { %2808 = vmatprep.subr.bf16.mxu0 %v4411_v6 }
 0x243   :  { %2826 = vmatpush1.bf16.msra.mxu1 %v4412_v13 }
 0x244   :  { %2828 = vmatprep.subr.bf16.mxu1 %v4413_v29 }
 0x245   :  { %2810 = vmatpush1.bf16.msra.mxu0 %v4414_v27 }
 0x246   :  { %2812 = vmatprep.subr.bf16.mxu0 %v4415_v35 }
 0x247   :  { %2830 = vmatpush1.bf16.msra.mxu1 %v4416_v47 }
 0x248   :  { %2832 = vmatprep.subr.bf16.mxu1 %v4417_v48 }
 0x249   :  { %2814 = vmatpush1.bf16.msra.mxu0 %v4418_v61 }
 0x24a   :  { %2104 = vmatprep.subr.msk.mxu0 %vm596_vm4, %v4419_v28 }
 0x24b   :  { %2834 = vmatpush1.bf16.msra.mxu1 %v4420_v32 }
 0x24c   :  { %2836 = vmatprep.subr.bf16.mxu1 %v4421_v9 }
 0x24d   :  { %2105 = vmatpush1.msk.msra.mxu0 %vm596_vm4, %v4422_v33 }
 0x24e   :  { %2840 = vmatprep.subr.bf16.mxu0 %v4423_v24 }
 0x24f   :  { %2838 = vmatpush1.bf16.msra.mxu1 %v4424_v37 }
 0x250   :  { %2107 = vmatprep.subr.msk.mxu1 %vm596_vm4, %v4425_v45 }
 0x253   :  { %2108 = vmatpush1.msk.msra.mxu1 %vm596_vm4, %v4426_v52 }
 0x254   :  { %2863 = vmatprep.subr.bf16.mxu1 %v4380_v63 }
 0x2ed   :  { %v2282_v56 = vpop.f32.mrb[8].mxu1 }
 0x2ee   :  { %v2283_v44 = vpop.f32.mrb[9].mxu1 }
 0x2ef   :  { %v2284_v62 = vadd.f32 %v2283_v44, %v2282_v56  ;;  %v2317_v14 = vpop.f32.mrb[8].mxu0  ;;  %v4427_v56 = vld [vmem:[#allocation40_spill] sm:$0xff]  ;;  %v4428_v44 = vld [vmem:[#allocation41_spill] sm:$0xff] }
 0x2f0   :  { %v2318_v15 = vpop.f32.mrb[9].mxu0 }
 0x2f1   :  { %v2319_v20 = vadd.f32 %v2318_v15, %v2317_v14  ;;  %v4430_v14 = vld [vmem:[#allocation43_spill] sm:$0xff]  ;;  %v4431_v15 = vld [vmem:[#allocation44_spill] sm:$0xff] }
 0x2f3   :  { %v1206_v46 = vadd.f32 %v2319_v20, %v2284_v62  ;;  %v4429_v62 = vld [vmem:[#allocation42_spill] sm:$0xff]  ;;  %v4432_v20 = vld [vmem:[#allocation45_spill] sm:$0xff] }
 0x307   :  { %v1345_v50 = vpop.f32.mrb[10].mxu0 }
 0x308   :  { %v2438_v49 = vpop.f32.mrb[11].mxu0 }
 0x309   :  { %v4435_v49 = vld [vmem:[#allocation48_spill] sm:$0xff] }
 0x30d   :  { %v2352_v51 = vpop.f32.mrb[10].mxu1 }
 0x30e   :  { %v2353_v1 = vpop.f32.mrb[11].mxu1 }
 0x30f   :  { %v2354_v7 = vadd.f32 %v2353_v1, %v2352_v51  ;;  %v4436_v51 = vld [vmem:[#allocation49_spill] sm:$0xff] }
 0x311   :  { %v1276_v11 = vadd.f32 %v2354_v7, %v1206_v46  ;;  %v4433_v46 = vld [vmem:[#allocation46_spill] sm:$0xff] }
 0x313   :  { %v1346_v8 = vadd.f32 %v1345_v50, %v1276_v11  ;;  %v4434_v50 = vld [vmem:[#allocation47_spill] sm:$0xff] }
 0x315   :  { %v1349_v12 = vmul.f32 0.0625, %v1346_v8 }
 0x317   :  { %v1351_v16 = vadd.f32 1e-05, %v1349_v12 }
 0x319   :  { %2978 = vrsqrt.f32 %v1351_v16 }
 0x323   :  { %v2979_v26 = vpop.eup %2978 }
 0x324   :  { %v1353_v30 = vmul.f32 %v2979_v26, %v1350_v17 }
 0x326   :  { %2106 = vmatmul.mubr.msk.f32.vlgmr.msra.gmra.mrb[12].mxu0 %vm592_vm5, %v1353_v30  ;;  %2109 = vmatmul.mubr.msk.f32.vlgmr.msra.gmra.mrb[12].mxu1 %vm592_vm5, %v1353_v30 }
 0x327   :  { %2842 = vmatpush1.bf16.msra.mxu0 %v4427_v56  ;;  %2865 = vmatpush3.bf16.msra.mxu1 %v4428_v44 }
 0x328   :  { %2844 = vmatprep.subr.bf16.mxu0 %v4429_v62  ;;  %2866 = vmatprep.subr.bf16.mxu1 %v4380_v63 }
 0x329   :  { %1563 = vmatprep.mubr.f32.mxu0 %v4387_v10  ;;  %2465 = vmatprep.mubr.msk.f32.mxu1 %vm3006_vm2, %v4387_v10 }
 0x32b   :  { %2846 = vmatpush1.bf16.msra.mxu0 %v4430_v14  ;;  %2868 = vmatpush3.bf16.msra.mxu1 %v4431_v15 }
 0x32c   :  { %2848 = vmatprep.subr.bf16.mxu0 %v4432_v20  ;;  %2869 = vmatprep.subr.bf16.mxu1 %v4380_v63 }
 0x32f   :  { %2850 = vmatpush1.bf16.msra.mxu0 %v4433_v46  ;;  %2871 = vmatpush3.bf16.msra.mxu1 %v4434_v50 }
 0x330   :  { %2852 = vmatprep.subr.bf16.mxu0 %v4435_v49  ;;  %2872 = vmatprep.subr.bf16.mxu1 %v4380_v63 }
 0x333   :  { %2854 = vmatpush1.bf16.msra.mxu0 %v4436_v51  ;;  %2874 = vmatpush3.bf16.msra.mxu1 %v3893_v18 }
 0x334   :  { %2856 = vmatprep.subr.bf16.mxu0 %v3900_v42  ;;  %2875 = vmatprep.subr.bf16.mxu1 %v4380_v63 }
 0x337   :  { %2858 = vmatpush1.bf16.msra.mxu0 %v3919_v58  ;;  %2877 = vmatpush3.bf16.msra.mxu1 %v3921_v31 }
 0x338   :  { %2860 = vmatprep.subr.bf16.mxu0 %v3928_v41  ;;  %2878 = vmatprep.subr.bf16.mxu1 %v4380_v63 }
 0x33b   :  { %2862 = vmatpush1.bf16.msra.mxu0 %v3941_v22  ;;  %2880 = vmatpush3.bf16.msra.mxu1 %v3943_v57 }
 0x33c   :  { %2110 = vmatprep.subr.msk.mxu0 %vm596_vm4, %v3950_v40  ;;  %2463 = vmatprep.subr.mxu1 %v4387_v10 }
 0x33f   :  { %2111 = vmatpush1.msk.msra.mxu0 %vm596_vm4, %v3960_v60  ;;  %2464 = vmatpush3.msk.msra.mxu1 %vm596_vm4, %v3965_v2 }
 0x340   :  { %2112 = vmatmul.mubr.msk.f32.vlgmr.msra.gmra.mrb[14].mxu0 %vm592_vm5, %v1353_v30  ;;  %2466 = vmatmul.mubr.msk.f32.vlgmr.msra.gmra.mrb[14].mxu1 %vm592_vm5, %v1353_v30 }
 0x341   :  { %2882 = vmatprep.subr.bf16.mxu0 %v3537_v36  ;;  %2906 = vmatprep.subr.bf16.mxu1 %v4401_v34  ;;  %v1640_v36 = vld [vmem:[%s4254_s2] sm:$0x1]  ;;  %s3008_s2 = smov [#allocation2]  }
 0x342   :  { %2884 = vmatpush1.bf16.msra.mxu0 %v4398_v21  ;;  %2908 = vmatpush1.bf16.msra.mxu1 %v4404_v43  ;;  %s2083_s14 = sshll.u32 %s3008_s2, 4  ;;  %s2084_s14 = int_to_ptr.vmem [resolvable:$true] %s2083_s14 }
 0x343   :  { %2886 = vmatprep.subr.bf16.mxu0 %v4399_v25  ;;  %2910 = vmatprep.subr.bf16.mxu1 %v4405_v54  ;;  %s2980_s15 = scalar_lea.vmem %s2084_s14, 224  ;;  %p2985_p1 = scmp.lt.s32.totalorder %s2084_s14, %s2084_s14 }
 0x344   :  { %1708 = vmatprep.mubr.f32.mxu0 %v4387_v10  ;;  %1779 = vmatprep.mubr.f32.mxu1 %v4387_v10  ;;  %p2981_p0 = scmp.ne.s32.totalorder %s2084_s14, %s2980_s15  ;;  %p2986_p2 = scmp.lt.s32.totalorder %s2980_s15, %s2980_s15 }
 0x346   :  { %2888 = vmatpush1.bf16.msra.mxu0 %v4402_v38  ;;  %2912 = vmatpush1.bf16.msra.mxu1 %v4408_v0  ;;  %p2987_p3 = por %p2986_p2, %p2985_p1 }
 0x347   :  { %2890 = vmatprep.subr.bf16.mxu0 %v4403_v39  ;;  %2914 = vmatprep.subr.bf16.mxu1 %v4409_v4 }
 0x348   :  { %p2988_p4 = pnand %p2987_p3, %p2981_p0 }
 0x34a   :  { %2892 = vmatpush1.bf16.msra.mxu0 %v4406_v55  ;;  %2916 = vmatpush1.bf16.msra.mxu1 %v4412_v13 }
 0x34b   :  { %2894 = vmatprep.subr.bf16.mxu0 %v4407_v59  ;;  %2918 = vmatprep.subr.bf16.mxu1 %v4413_v29 }
 0x34e   :  { %2896 = vmatpush1.bf16.msra.mxu0 %v4410_v5  ;;  %2920 = vmatpush1.bf16.msra.mxu1 %v4416_v47 }
 0x34f   :  { %2898 = vmatprep.subr.bf16.mxu0 %v4411_v6  ;;  %2922 = vmatprep.subr.bf16.mxu1 %v4417_v48 }
 0x352   :  { %2900 = vmatpush1.bf16.msra.mxu0 %v4414_v27  ;;  %2924 = vmatpush1.bf16.msra.mxu1 %v4420_v32 }
 0x353   :  { %2902 = vmatprep.subr.bf16.mxu0 %v4415_v35  ;;  %2926 = vmatprep.subr.bf16.mxu1 %v4421_v9 }
 0x356   :  { %2904 = vmatpush1.bf16.msra.mxu0 %v4418_v61  ;;  %2928 = vmatpush1.bf16.msra.mxu1 %v4424_v37 }
 0x357   :  { %2115 = vmatprep.subr.msk.mxu0 %vm596_vm4, %v4419_v28  ;;  %2118 = vmatprep.subr.msk.mxu1 %vm596_vm4, %v4425_v45 }
 0x35a   :  { %2116 = vmatpush1.msk.msra.mxu0 %vm596_vm4, %v4422_v33  ;;  %2119 = vmatpush1.msk.msra.mxu1 %vm596_vm4, %v4426_v52 }
 0x35b   :  { %2117 = vmatmul.mubr.msk.f32.vlgmr.msra.gmra.mrb[16].mxu0 %vm592_vm5, %v1640_v36  ;;  %2120 = vmatmul.mubr.msk.f32.vlgmr.msra.gmra.mrb[16].mxu1 %vm592_vm5, %v1640_v36 }
 0x35c   :  { %2930 = vmatprep.subr.bf16.mxu0 %v4423_v24  ;;  %2953 = vmatprep.subr.bf16.mxu1 %v4380_v63 }
 0x35d   :  { %2932 = vmatpush1.bf16.msra.mxu0 %v4427_v56  ;;  %2955 = vmatpush3.bf16.msra.mxu1 %v4428_v44 }
 0x35e   :  { %2934 = vmatprep.subr.bf16.mxu0 %v4429_v62  ;;  %2956 = vmatprep.subr.bf16.mxu1 %v4380_v63 }
 0x35f   :  { %1850 = vmatprep.mubr.f32.mxu0 %v4387_v10  ;;  %2494 = vmatprep.mubr.msk.f32.mxu1 %vm3006_vm2, %v4387_v10 }
 0x361   :  { %2936 = vmatpush1.bf16.msra.mxu0 %v4430_v14  ;;  %2958 = vmatpush3.bf16.msra.mxu1 %v4431_v15 }
 0x362   :  { %2938 = vmatprep.subr.bf16.mxu0 %v4432_v20  ;;  %2959 = vmatprep.subr.bf16.mxu1 %v4380_v63 }
 0x365   :  { %2940 = vmatpush1.bf16.msra.mxu0 %v4433_v46  ;;  %2961 = vmatpush3.bf16.msra.mxu1 %v4434_v50 }
 0x366   :  { %2942 = vmatprep.subr.bf16.mxu0 %v4435_v49  ;;  %2962 = vmatprep.subr.bf16.mxu1 %v4380_v63 }
 0x369   :  { %2944 = vmatpush1.bf16.msra.mxu0 %v4436_v51  ;;  %2964 = vmatpush3.bf16.msra.mxu1 %v3893_v18 }
 0x36a   :  { %2946 = vmatprep.subr.bf16.mxu0 %v3900_v42  ;;  %2965 = vmatprep.subr.bf16.mxu1 %v4380_v63 }
 0x36d   :  { %2948 = vmatpush1.bf16.msra.mxu0 %v3919_v58  ;;  %2967 = vmatpush3.bf16.msra.mxu1 %v3921_v31 }
 0x36e   :  { %2950 = vmatprep.subr.bf16.mxu0 %v3928_v41  ;;  %2968 = vmatprep.subr.bf16.mxu1 %v4380_v63 }
 0x371   :  { %2952 = vmatpush1.bf16.msra.mxu0 %v3941_v22  ;;  %2970 = vmatpush3.bf16.msra.mxu1 %v3943_v57 }
 0x372   :  { %2121 = vmatprep.subr.msk.mxu0 %vm596_vm4, %v3950_v40  ;;  %2492 = vmatprep.subr.mxu1 %v4387_v10 }
 0x375   :  { %2122 = vmatpush1.msk.msra.mxu0 %vm596_vm4, %v3960_v60  ;;  %2493 = vmatpush3.msk.msra.mxu1 %vm596_vm4, %v3965_v2 }
 0x376   :  { %2123 = vmatmul.mubr.msk.f32.vlgmr.msra.gmra.mrb[18].mxu0 %vm592_vm5, %v1640_v36  ;;  %2495 = vmatmul.mubr.msk.f32.vlgmr.msra.gmra.mrb[18].mxu1 %vm592_vm5, %v1640_v36 }
 0x3f9   :  { %v1423_v63 = vpop.f32.mrb[12].mxu0  ;;  %v1494_v41 = vpop.f32.mrb[12].mxu1 }
 0x3fa   :  { %v1930_v42 = vrot.slane %v1423_v63, %v4010_v3  ;;  %v1938_v18 = vrot.slane %v1494_v41, %v4010_v3  ;;  %v1425_v58 = vpop.f32.mrb[13].mxu0  ;;  %v1496_v31 = vpop.f32.mrb[13].mxu1 }
 0x3fb   :  { %v1934_v10 = vrot.slane %v1425_v58, %v4010_v3  ;;  %v1942_v22 = vrot.slane %v1496_v31, %v4010_v3 }
 0x3fd   :  { %v1962_v57 = vcombine.low %v1930_v42, %v1934_v10  ;;  %v1963_v40 = vcombine.low %v1938_v18, %v1942_v22 }
 0x3ff   :  { %v1970_v60 = vrot.slane %v1962_v57, %v3254_v19  ;;  %v1977_v2 = vrot.slane %v1963_v40, %v3254_v19 }
 0x401   :  { %v1978_v21 = vcombine.low %v1970_v60, %v1977_v2 }
 0x403   :  { %v1997_v24 = vmul.f32 %v1978_v21, %v4019_v53 }
 0x413   :  { %v1565_v25 = vpop.f32.mrb[14].mxu0  ;;  %v1636_v34 = vpop.f32.mrb[14].mxu1 }
 0x414   :  { %v1946_v38 = vrot.slane %v1565_v25, %v4010_v3  ;;  %v1567_v39 = vpop.f32.mrb[15].mxu0  ;;  %v2467_v43 = vpop.f32.mrb[15].mxu1  ;;  %v1954_v54 = vrot.slane %v1636_v34, %v4010_v3 }
 0x415   :  { %v1950_v55 = vrot.slane %v1567_v39, %v4010_v3 }
 0x416   :  { %v1993_v0 = vrot.slane %v1954_v54, %v3254_v19 }
 0x417   :  { %v1979_v59 = vcombine.low %v1946_v38, %v1950_v55 }
 0x419   :  { %v1986_v4 = vrot.slane %v1979_v59, %v3254_v19 }
 0x41b   :  { %v1994_v5 = vcombine.low %v1986_v4, %v1993_v0 }
 0x41d   :  { %v1998_v56 = vmul.f32 %v1994_v5, %v4037_v23 }
 0x42e   :  { %v1710_v6 = vpop.f32.mrb[16].mxu0  ;;  %v1781_v13 = vpop.f32.mrb[16].mxu1 }
 0x42f   :  { %v2002_v29 = vrot.slane %v1710_v6, %v4010_v3  ;;  %v2010_v27 = vrot.slane %v1781_v13, %v4010_v3  ;;  %v1712_v35 = vpop.f32.mrb[17].mxu0  ;;  %v1783_v47 = vpop.f32.mrb[17].mxu1 }
 0x430   :  { %v2006_v48 = vrot.slane %v1712_v35, %v4010_v3  ;;  %v2014_v61 = vrot.slane %v1783_v47, %v4010_v3 }
 0x432   :  { %v2034_v28 = vcombine.low %v2002_v29, %v2006_v48  ;;  %v2035_v32 = vcombine.low %v2010_v27, %v2014_v61 }
 0x434   :  { %v2042_v9 = vrot.slane %v2034_v28, %v3254_v19  ;;  %v2049_v33 = vrot.slane %v2035_v32, %v3254_v19 }
 0x436   :  { %v2050_v37 = vcombine.low %v2042_v9, %v2049_v33 }
 0x438   :  { %v2069_v45 = vadd.f32 %v2050_v37, %v1997_v24 }
 0x43a   :  { %2071 = vst [vmem:[#allocation2] sm:$0xff] %v2069_v45 }
 0x449   :  { %v1852_v52 = vpop.f32.mrb[18].mxu0  ;;  %v1923_v1 = vpop.f32.mrb[18].mxu1 }
 0x44a   :  { %v2018_v7 = vrot.slane %v1852_v52, %v4010_v3  ;;  %v1854_v11 = vpop.f32.mrb[19].mxu0  ;;  %v2026_v8 = vrot.slane %v1923_v1, %v4010_v3  ;;  %v2496_v12 = vpop.f32.mrb[19].mxu1 }
 0x44b   :  { %v2022_v16 = vrot.slane %v1854_v11, %v4010_v3 }
 0x44c   :  { %v2065_v26 = vrot.slane %v2026_v8, %v3254_v19 }
 0x44d   :  { %v2051_v17 = vcombine.low %v2018_v7, %v2022_v16 }
 0x44f   :  { %v2058_v30 = vrot.slane %v2051_v17, %v3254_v19 }
 0x451   :  { %v2066_v53 = vcombine.low %v2058_v30, %v2065_v26 }
 0x453   :  { %v2070_v44 = vadd.f32 %v2066_v53, %v1998_v56 }
 0x455   :  { %2076 = vst.msk [vmem:[#allocation2 + $0x8] sm:$0x3f] %vm2075_vm9, %v2070_v44 }
 0x456   :  { %2991 = shalt.err (!%p2988_p4)
}
 0x457   :  { %s2992_s18 = scalar_lea.hbm %s4257_s5, 224 }
 0x458   :  { %p2993_p5 = scmp.ne.s32.totalorder %s4257_s5, %s2992_s18  ;;  %p2996_p6 = scmp.lt.u32.totalorder %s2992_s18, %s4257_s5 }
 0x45a   :  { %p2998_p7 = pnand %p2996_p6, %p2993_p5 }
 0x45c   :  { %3001 = shalt.err (!%p2998_p7)
}
 0x45d   :  { %2086 = dma.vmem_to_hbm [thread:$0]  %s2084_s14, 224, %s4257_s5, [#allocation3]  }
 0x45e   :  { %3002 = dma.done.wait [#allocation3], 224  }
 0x45f   :  { %3003 = vsyncadd [#allocation3], 4294967072 }
 0x460   :  { %2090 = vsyncpa [#allocation3], 1 }

</bundles_post_ra>
